<compile_context>
chip_gen: v7x
topology: tpu7x:2x2x1
jax: 0.10.0
libtpu: 0.0.40
codegen_flags: <defaults>
</compile_context>

<pallas_src>
import functools
import re

import jax
import jax.numpy as jnp
from jax import lax
from jax.experimental import pallas as pl
from jax.experimental.pallas import tpu as pltpu


# --------------------------------------------------------------------------
# Kernels
# --------------------------------------------------------------------------
def _rel_time_kernel_grouped(tq_ref, tk_ref, emb_ref, out_ref, *,
                             clip, tlq, onehot_dtype):
    """Lane-grouped path (H < 128, G = 128 // H).

    tq_ref : (1, L, 1) int32   -- all query times for this batch (resident)
    tk_ref : (1, G, Lg) int32  -- tk_ref[0, g, kb] = time[kb*G + g]
    emb_ref: (G, V, G*H)       -- emb_ref[g, v, g*H:(g+1)*H] = table[v], else 0
    out_ref: (1, tlq*Lg, G*H)  -- byte-identical to the (tlq*L, H) row-major slab
    """
    i = pl.program_id(1)
    G, V, GH = emb_ref.shape
    Lg = tk_ref.shape[2]

    start = i * tlq
    if tlq % 8 == 0:                       # static condition (tlq is Python int)
        start = pl.multiple_of(start, 8)
    tq = tq_ref[0, pl.ds(start, tlq), :]   # (tlq, 1) int32

    rows = tlq * Lg
    acc = jnp.zeros((rows, GH), jnp.float32)
    for g in range(G):                     # static unroll, G = 128 // H
        tkg = tk_ref[0, g:g + 1, :]                          # (1, Lg)
        diff = jnp.minimum(jnp.abs(tq - tkg), clip)          # (tlq, Lg) int32
        iota_v = lax.broadcasted_iota(jnp.int32, (tlq, Lg, V), 2)
        onehot = (diff[:, :, None] == iota_v).astype(onehot_dtype)
        onehot2d = onehot.reshape(rows, V)                   # leading-dim collapse
        acc = acc + jnp.dot(onehot2d, emb_ref[g],
                            preferred_element_type=jnp.float32,
                            precision=lax.Precision.HIGHEST)
    out_ref[0] = acc.astype(out_ref.dtype)                   # 128-lane unmasked vst


def _rel_time_kernel(tq_ref, tk_ref, emb_ref, out_ref, *, clip, tlq, onehot_dtype):
    """Fallback path: plain (tlq*L, H) output slab.

    tq_ref : (1, L, 1) int32 ; tk_ref : (1, 1, L) int32
    emb_ref: (V, H)          ; out_ref: (1, tlq*L, H)
    """
    i = pl.program_id(1)
    V, _ = emb_ref.shape
    L = tk_ref.shape[2]

    start = i * tlq
    if tlq % 8 == 0:
        start = pl.multiple_of(start, 8)
    tq = tq_ref[0, pl.ds(start, tlq), :]                     # (tlq, 1)
    tk = tk_ref[0]                                           # (1, L)

    diff = jnp.minimum(jnp.abs(tq - tk), clip)               # (tlq, L) int32
    iota_v = lax.broadcasted_iota(jnp.int32, (tlq, L, V), 2)
    onehot = (diff[:, :, None] == iota_v).astype(onehot_dtype)
    onehot2d = onehot.reshape(tlq * L, V)
    res = jnp.dot(onehot2d, emb_ref[...],
                  preferred_element_type=jnp.float32,
                  precision=lax.Precision.HIGHEST)
    out_ref[0] = res.astype(out_ref.dtype)


# --------------------------------------------------------------------------
# Wrapper helpers
# --------------------------------------------------------------------------
def _round_up(x, m):
    return -(-x // m) * m


def _vmem_limit_bytes():
    cap = 64 * 1024 * 1024                 # conservative fallback (v7x per-TC)
    try:
        info = pltpu.get_tpu_info()
        c = getattr(info, "vmem_capacity_bytes", None)
        if c:
            cap = int(c)
    except Exception:
        pass
    headroom = 12 * 1024 * 1024
    return max(cap - headroom, 32 * 1024 * 1024)


def _tpu_generation():
    try:
        kind = jax.devices()[0].device_kind
        m = re.search(r"v(\d+)", kind)
        if m:
            return int(m.group(1))
    except Exception:
        pass
    return 0


def _pick_query_tile(L, step_bytes, budget, num_batches, min_steps=8):
    """Largest query-row tile fitting the VMEM budget, keeping >= min_steps grid
    steps (pipelining / megacore)."""
    cands = sorted((d for d in range(8, L + 1, 8) if L % d == 0), reverse=True)
    if not cands:
        cands = [L]
    for t in cands:
        if step_bytes(t) <= budget and num_batches * (L // t) >= min_steps:
            return t
    for t in cands:
        if step_bytes(t) <= budget:
            return t
    return cands[-1]


# --------------------------------------------------------------------------
# Public entry point
# --------------------------------------------------------------------------
def relative_time_embedding(time, emb_table, clip, max_len=None):
    """time: (B, L) integer; emb_table: (clip+1, H) -> (B, L, L, H) in table dtype."""
    del max_len                            # accepted but unused (as in the PyTorch forward)
    B, L = time.shape
    V, H = emb_table.shape
    assert V == clip + 1
    clip = int(clip)

    out_dtype = emb_table.dtype
    out_itemsize = jnp.dtype(out_dtype).itemsize

    # One-hot / MXU dtype: bf16 only where the VPU is bf16-native and the table
    # is bf16; otherwise f32 (exact; v5e has no bf16 VALU).
    if emb_table.dtype == jnp.bfloat16 and _tpu_generation() >= 6:
        compute_dtype = jnp.bfloat16
    else:
        compute_dtype = jnp.float32
    oh_itemsize = jnp.dtype(compute_dtype).itemsize

    vmem_limit = _vmem_limit_bytes()
    budget = int(0.6 * vmem_limit)
    vpad = _round_up(V, 128)

    # Range-reduce before the int32 cast (overflow-safe unless the within-batch
    # spread itself exceeds 2**31).
    time = jnp.asarray(time)
    time = time - jnp.min(time, axis=1, keepdims=True)
    time_i32 = time.astype(jnp.int32)
    time_q = time_i32[:, :, None]                            # (B, L, 1)

    G = 128 // H if (0 < H < 128 and 128 % H == 0) else 1
    grouped = G > 1 and L % G == 0 and (L // G) % 8 == 0

    if grouped:
        Lg = L // G

        def step_bytes(t):
            rows = t * Lg
            out_blk = 2 * t * L * H * out_itemsize           # double-buffered output
            onehot = 2 * rows * vpad * oh_itemsize           # per-g one-hot (+ slack)
            iota = rows * vpad * 4                           # int32 iota / compare temp
            acc = rows * G * H * 4                           # f32 accumulator
            return out_blk + onehot + iota + acc

        tlq = _pick_query_tile(L, step_bytes, budget, B)
        num_tiles = L // tlq

        # Key times rearranged so group member g is a contiguous row.
        time_k = time_i32.reshape(B, Lg, G).transpose(0, 2, 1)          # (B, G, Lg)
        # Column-shifted table copies: emb_g[g, v, g*H:(g+1)*H] = table[v].
        emb_c = emb_table.astype(compute_dtype)
        emb_g = jnp.zeros((G, V, G * H), compute_dtype)
        for g in range(G):
            emb_g = emb_g.at[g, :, g * H:(g + 1) * H].set(emb_c)

        kernel = functools.partial(_rel_time_kernel_grouped, clip=clip,
                                   tlq=tlq, onehot_dtype=compute_dtype)
        out = pl.pallas_call(
            kernel,
            out_shape=jax.ShapeDtypeStruct((B, (L * L) // G, G * H), out_dtype),
            grid_spec=pltpu.PrefetchScalarGridSpec(
                num_scalar_prefetch=0,
                grid=(B, num_tiles),
                in_specs=[
                    pl.BlockSpec((1, L, 1), lambda b, i: (b, 0, 0)),
                    pl.BlockSpec((1, G, Lg), lambda b, i: (b, 0, 0)),
                    pl.BlockSpec((G, V, G * H), lambda b, i: (0, 0, 0)),
                ],
                out_specs=pl.BlockSpec((1, tlq * Lg, G * H),
                                       lambda b, i: (b, i, 0)),
            ),
            compiler_params=pltpu.CompilerParams(
                dimension_semantics=("parallel", "parallel"),
                vmem_limit_bytes=vmem_limit,
            ),
        )(time_q, time_k, emb_g)
        return out.reshape(B, L, L, H)     # byte-identical reinterpretation

    # ---------------- Fallback: plain (TLq*L, H) output slab ----------------
    hpad = _round_up(H, 128)

    def step_bytes(t):
        rows = t * L
        out_blk = 2 * rows * H * out_itemsize
        onehot = rows * vpad * oh_itemsize
        iota = rows * vpad * 4
        res = rows * hpad * 4
        return out_blk + onehot + iota + res

    tlq = _pick_query_tile(L, step_bytes, budget, B)
    num_tiles = L // tlq
    time_k = time_i32[:, None, :]                            # (B, 1, L)
    emb_c = emb_table.astype(compute_dtype)

    kernel = functools.partial(_rel_time_kernel, clip=clip,
                               tlq=tlq, onehot_dtype=compute_dtype)
    out = pl.pallas_call(
        kernel,
        out_shape=jax.ShapeDtypeStruct((B, L * L, H), out_dtype),
        grid_spec=pltpu.PrefetchScalarGridSpec(
            num_scalar_prefetch=0,
            grid=(B, num_tiles),
            in_specs=[
                pl.BlockSpec((1, L, 1), lambda b, i: (b, 0, 0)),
                pl.BlockSpec((1, 1, L), lambda b, i: (b, 0, 0)),
                pl.BlockSpec((V, H), lambda b, i: (0, 0)),
            ],
            out_specs=pl.BlockSpec((1, tlq * L, H), lambda b, i: (b, i, 0)),
        ),
        compiler_params=pltpu.CompilerParams(
            dimension_semantics=("parallel", "parallel"),
            vmem_limit_bytes=vmem_limit,
        ),
    )(time_q, time_k, emb_c)
    return out.reshape(B, L, L, H)


# --------------------------------------------------------------------------
# Demo / correctness check
# --------------------------------------------------------------------------
if __name__ == "__main__":
    key = jax.random.PRNGKey(0)
    k_time, k_emb, k_time2, k_emb2 = jax.random.split(key, 4)

    # --- Config 1: H divides 128 -> lane-grouped (unmasked-store) path. ---
    B, L, H, clip = 2, 32, 32, 16
    V = clip + 1
    emb_table = jax.random.normal(k_emb, (V, H), dtype=jnp.float32)
    time = jax.random.randint(k_time, (B, L), 0, 50, dtype=jnp.int32)

    out = relative_time_embedding(time, emb_table, clip, max_len=L)
    out = jax.block_until_ready(out)
    diff_ref = jnp.minimum(jnp.abs(time[:, :, None] - time[:, None, :]), clip)
    ref = jnp.take(emb_table, diff_ref, axis=0)
    assert out.shape == (B, L, L, H)
    assert out.dtype == emb_table.dtype
    assert jnp.allclose(out, ref, atol=1e-5, rtol=1e-5), "grouped path mismatch"

    # --- Config 2: H does not divide 128 -> plain (rows, H) fallback path. ---
    B2, L2, H2, clip2 = 2, 16, 48, 7
    V2 = clip2 + 1
    emb_table2 = jax.random.normal(k_emb2, (V2, H2), dtype=jnp.float32)
    time2 = jax.random.randint(k_time2, (B2, L2), 0, 20, dtype=jnp.int32)

    out2 = relative_time_embedding(time2, emb_table2, clip2, max_len=L2)
    out2 = jax.block_until_ready(out2)
    diff_ref2 = jnp.minimum(jnp.abs(time2[:, :, None] - time2[:, None, :]), clip2)
    ref2 = jnp.take(emb_table2, diff_ref2, axis=0)
    assert out2.shape == (B2, L2, L2, H2)
    assert out2.dtype == emb_table2.dtype
    assert jnp.allclose(out2, ref2, atol=1e-5, rtol=1e-5), "fallback path mismatch"

    print("KERNEL_OK")
</pallas_src>

<mosaic_0001>
module attributes {stable_mosaic.version = 11 : i64} {
  func.func @_rel_time_kernel_grouped(%arg0: i32, %arg1: i32, %arg2: memref<1x32x1xi32, #tpu.memory_space<vmem>>, %arg3: memref<1x4x8xi32, #tpu.memory_space<vmem>>, %arg4: memref<4x17x128xf32, #tpu.memory_space<vmem>>, %arg5: memref<1x64x128xf32, #tpu.memory_space<vmem>>) attributes {dimension_semantics = [#tpu.dimension_semantics<parallel>, #tpu.dimension_semantics<parallel>], iteration_bounds = array<i64: 2, 4>, scalar_prefetch = 0 : i64, scratch_operands = 0 : i64, tpu.core_type = #tpu.core_type<tc>, window_params = [{transform_indices = @transform_0, window_bounds = array<i64: 1, 32, 1>}, {transform_indices = @transform_1, window_bounds = array<i64: 1, 4, 8>}, {pipeline_mode = #tpu.pipeline_mode<synchronous>, transform_indices = @transform_2, window_bounds = array<i64: 4, 17, 128>}, {transform_indices = @transform_3, window_bounds = array<i64: 1, 64, 128>}]} {
    %c8_i32 = arith.constant 8 : i32
    %0 = arith.muli %arg1, %c8_i32 : i32
    %1 = tpu.assume_multiple %0, 8 : i32
    %c0 = arith.constant 0 : index
    %2 = arith.index_cast %1 : i32 to index
    %c0_0 = arith.constant 0 : index
    %3 = vector.load %arg2[%c0, %2, %c0_0] : memref<1x32x1xi32, #tpu.memory_space<vmem>>, vector<1x8x1xi32>
    %4 = vector.shape_cast %3 : vector<1x8x1xi32> to vector<8x1xi32>
    %cst = arith.constant 0.000000e+00 : f32
    %5 = vector.broadcast %cst : f32 to vector<64x128xf32>
    %c0_1 = arith.constant 0 : index
    %c0_2 = arith.constant 0 : index
    %c0_3 = arith.constant 0 : index
    %6 = vector.load %arg3[%c0_1, %c0_2, %c0_3] : memref<1x4x8xi32, #tpu.memory_space<vmem>>, vector<1x1x8xi32>
    %7 = vector.shape_cast %6 : vector<1x1x8xi32> to vector<1x8xi32>
    %8 = vector.broadcast %4 : vector<8x1xi32> to vector<8x8xi32>
    %9 = vector.broadcast %7 : vector<1x8xi32> to vector<8x8xi32>
    %10 = arith.subi %8, %9 : vector<8x8xi32>
    %11 = math.absi %10 : vector<8x8xi32>
    %c16_i32 = arith.constant 16 : i32
    %12 = vector.broadcast %c16_i32 : i32 to vector<8x8xi32>
    %13 = arith.minsi %11, %12 : vector<8x8xi32>
    %14 = tpu.iota {dimensions = array<i32: 2>} : vector<8x8x17xi32>
    %15 = vector.shape_cast %13 : vector<8x8xi32> to vector<8x8x1xi32>
    %16 = vector.broadcast %15 : vector<8x8x1xi32> to vector<8x8x17xi32>
    %17 = arith.cmpi eq, %16, %14 : vector<8x8x17xi32>
    %18 = arith.extui %17 : vector<8x8x17xi1> to vector<8x8x17xi32>
    %19 = arith.sitofp %18 : vector<8x8x17xi32> to vector<8x8x17xf32>
    %20 = vector.shape_cast %19 : vector<8x8x17xf32> to vector<64x17xf32>
    %c0_4 = arith.constant 0 : index
    %c0_5 = arith.constant 0 : index
    %c0_6 = arith.constant 0 : index
    %21 = vector.load %arg4[%c0_4, %c0_5, %c0_6] : memref<4x17x128xf32, #tpu.memory_space<vmem>>, vector<1x17x128xf32>
    %22 = vector.shape_cast %21 : vector<1x17x128xf32> to vector<17x128xf32>
    %cst_7 = arith.constant dense<0.000000e+00> : vector<64x128xf32>
    %23 = tpu.matmul %20, %22, %cst_7 {dimension_numbers = #tpu.dot_dimension_numbers<[1], [0], [0], [1], [0, 0, 1, 1], [], []>, precision = #tpu.contract_precision<fp32>} : vector<64x17xf32>, vector<17x128xf32>, vector<64x128xf32> -> vector<64x128xf32>
    %24 = arith.addf %5, %23 : vector<64x128xf32>
    %c0_8 = arith.constant 0 : index
    %c1 = arith.constant 1 : index
    %c0_9 = arith.constant 0 : index
    %25 = vector.load %arg3[%c0_8, %c1, %c0_9] : memref<1x4x8xi32, #tpu.memory_space<vmem>>, vector<1x1x8xi32>
    %26 = vector.shape_cast %25 : vector<1x1x8xi32> to vector<1x8xi32>
    %27 = vector.broadcast %4 : vector<8x1xi32> to vector<8x8xi32>
    %28 = vector.broadcast %26 : vector<1x8xi32> to vector<8x8xi32>
    %29 = arith.subi %27, %28 : vector<8x8xi32>
    %30 = math.absi %29 : vector<8x8xi32>
    %c16_i32_10 = arith.constant 16 : i32
    %31 = vector.broadcast %c16_i32_10 : i32 to vector<8x8xi32>
    %32 = arith.minsi %30, %31 : vector<8x8xi32>
    %33 = tpu.iota {dimensions = array<i32: 2>} : vector<8x8x17xi32>
    %34 = vector.shape_cast %32 : vector<8x8xi32> to vector<8x8x1xi32>
    %35 = vector.broadcast %34 : vector<8x8x1xi32> to vector<8x8x17xi32>
    %36 = arith.cmpi eq, %35, %33 : vector<8x8x17xi32>
    %37 = arith.extui %36 : vector<8x8x17xi1> to vector<8x8x17xi32>
    %38 = arith.sitofp %37 : vector<8x8x17xi32> to vector<8x8x17xf32>
    %39 = vector.shape_cast %38 : vector<8x8x17xf32> to vector<64x17xf32>
    %c1_11 = arith.constant 1 : index
    %c0_12 = arith.constant 0 : index
    %c0_13 = arith.constant 0 : index
    %40 = vector.load %arg4[%c1_11, %c0_12, %c0_13] : memref<4x17x128xf32, #tpu.memory_space<vmem>>, vector<1x17x128xf32>
    %41 = vector.shape_cast %40 : vector<1x17x128xf32> to vector<17x128xf32>
    %cst_14 = arith.constant dense<0.000000e+00> : vector<64x128xf32>
    %42 = tpu.matmul %39, %41, %cst_14 {dimension_numbers = #tpu.dot_dimension_numbers<[1], [0], [0], [1], [0, 0, 1, 1], [], []>, precision = #tpu.contract_precision<fp32>} : vector<64x17xf32>, vector<17x128xf32>, vector<64x128xf32> -> vector<64x128xf32>
    %43 = arith.addf %24, %42 : vector<64x128xf32>
    %c0_15 = arith.constant 0 : index
    %c2 = arith.constant 2 : index
    %c0_16 = arith.constant 0 : index
    %44 = vector.load %arg3[%c0_15, %c2, %c0_16] : memref<1x4x8xi32, #tpu.memory_space<vmem>>, vector<1x1x8xi32>
    %45 = vector.shape_cast %44 : vector<1x1x8xi32> to vector<1x8xi32>
    %46 = vector.broadcast %4 : vector<8x1xi32> to vector<8x8xi32>
    %47 = vector.broadcast %45 : vector<1x8xi32> to vector<8x8xi32>
    %48 = arith.subi %46, %47 : vector<8x8xi32>
    %49 = math.absi %48 : vector<8x8xi32>
    %c16_i32_17 = arith.constant 16 : i32
    %50 = vector.broadcast %c16_i32_17 : i32 to vector<8x8xi32>
    %51 = arith.minsi %49, %50 : vector<8x8xi32>
    %52 = tpu.iota {dimensions = array<i32: 2>} : vector<8x8x17xi32>
    %53 = vector.shape_cast %51 : vector<8x8xi32> to vector<8x8x1xi32>
    %54 = vector.broadcast %53 : vector<8x8x1xi32> to vector<8x8x17xi32>
    %55 = arith.cmpi eq, %54, %52 : vector<8x8x17xi32>
    %56 = arith.extui %55 : vector<8x8x17xi1> to vector<8x8x17xi32>
    %57 = arith.sitofp %56 : vector<8x8x17xi32> to vector<8x8x17xf32>
    %58 = vector.shape_cast %57 : vector<8x8x17xf32> to vector<64x17xf32>
    %c2_18 = arith.constant 2 : index
    %c0_19 = arith.constant 0 : index
    %c0_20 = arith.constant 0 : index
    %59 = vector.load %arg4[%c2_18, %c0_19, %c0_20] : memref<4x17x128xf32, #tpu.memory_space<vmem>>, vector<1x17x128xf32>
    %60 = vector.shape_cast %59 : vector<1x17x128xf32> to vector<17x128xf32>
    %cst_21 = arith.constant dense<0.000000e+00> : vector<64x128xf32>
    %61 = tpu.matmul %58, %60, %cst_21 {dimension_numbers = #tpu.dot_dimension_numbers<[1], [0], [0], [1], [0, 0, 1, 1], [], []>, precision = #tpu.contract_precision<fp32>} : vector<64x17xf32>, vector<17x128xf32>, vector<64x128xf32> -> vector<64x128xf32>
    %62 = arith.addf %43, %61 : vector<64x128xf32>
    %c0_22 = arith.constant 0 : index
    %c3 = arith.constant 3 : index
    %c0_23 = arith.constant 0 : index
    %63 = vector.load %arg3[%c0_22, %c3, %c0_23] : memref<1x4x8xi32, #tpu.memory_space<vmem>>, vector<1x1x8xi32>
    %64 = vector.shape_cast %63 : vector<1x1x8xi32> to vector<1x8xi32>
    %65 = vector.broadcast %4 : vector<8x1xi32> to vector<8x8xi32>
    %66 = vector.broadcast %64 : vector<1x8xi32> to vector<8x8xi32>
    %67 = arith.subi %65, %66 : vector<8x8xi32>
    %68 = math.absi %67 : vector<8x8xi32>
    %c16_i32_24 = arith.constant 16 : i32
    %69 = vector.broadcast %c16_i32_24 : i32 to vector<8x8xi32>
    %70 = arith.minsi %68, %69 : vector<8x8xi32>
    %71 = tpu.iota {dimensions = array<i32: 2>} : vector<8x8x17xi32>
    %72 = vector.shape_cast %70 : vector<8x8xi32> to vector<8x8x1xi32>
    %73 = vector.broadcast %72 : vector<8x8x1xi32> to vector<8x8x17xi32>
    %74 = arith.cmpi eq, %73, %71 : vector<8x8x17xi32>
    %75 = arith.extui %74 : vector<8x8x17xi1> to vector<8x8x17xi32>
    %76 = arith.sitofp %75 : vector<8x8x17xi32> to vector<8x8x17xf32>
    %77 = vector.shape_cast %76 : vector<8x8x17xf32> to vector<64x17xf32>
    %c3_25 = arith.constant 3 : index
    %c0_26 = arith.constant 0 : index
    %c0_27 = arith.constant 0 : index
    %78 = vector.load %arg4[%c3_25, %c0_26, %c0_27] : memref<4x17x128xf32, #tpu.memory_space<vmem>>, vector<1x17x128xf32>
    %79 = vector.shape_cast %78 : vector<1x17x128xf32> to vector<17x128xf32>
    %cst_28 = arith.constant dense<0.000000e+00> : vector<64x128xf32>
    %80 = tpu.matmul %77, %79, %cst_28 {dimension_numbers = #tpu.dot_dimension_numbers<[1], [0], [0], [1], [0, 0, 1, 1], [], []>, precision = #tpu.contract_precision<fp32>} : vector<64x17xf32>, vector<17x128xf32>, vector<64x128xf32> -> vector<64x128xf32>
    %81 = arith.addf %62, %80 : vector<64x128xf32>
    %c0_29 = arith.constant 0 : index
    %c0_30 = arith.constant 0 : index
    %c0_31 = arith.constant 0 : index
    %82 = vector.load %arg5[%c0_29, %c0_30, %c0_31] : memref<1x64x128xf32, #tpu.memory_space<vmem>>, vector<1x64x128xf32>
    %83 = vector.shape_cast %82 : vector<1x64x128xf32> to vector<64x128xf32>
    %84 = vector.shape_cast %81 : vector<64x128xf32> to vector<1x64x128xf32>
    tpu.vector_store %arg5[%c0_29, %c0_30, %c0_31], %84 {strides = array<i32>} : memref<1x64x128xf32, #tpu.memory_space<vmem>>, vector<1x64x128xf32>,
    return
  }
  func.func @transform_0(%arg0: i32, %arg1: i32) -> (i32, i32, i32) {
    %c0_i32 = arith.constant 0 : i32
    %c0_i32_0 = arith.constant 0 : i32
    %c0_i32_1 = arith.constant 0 : i32
    return %arg0, %c0_i32, %c0_i32_0 : i32, i32, i32
  }
  func.func @transform_1(%arg0: i32, %arg1: i32) -> (i32, i32, i32) {
    %c0_i32 = arith.constant 0 : i32
    %c0_i32_0 = arith.constant 0 : i32
    %c0_i32_1 = arith.constant 0 : i32
    return %arg0, %c0_i32, %c0_i32_0 : i32, i32, i32
  }
  func.func @transform_2(%arg0: i32, %arg1: i32) -> (i32, i32, i32) {
    %c0_i32 = arith.constant 0 : i32
    %c0_i32_0 = arith.constant 0 : i32
    %c0_i32_1 = arith.constant 0 : i32
    %c0_i32_2 = arith.constant 0 : i32
    return %c0_i32, %c0_i32_0, %c0_i32_1 : i32, i32, i32
  }
  func.func @transform_3(%arg0: i32, %arg1: i32) -> (i32, i32, i32) {
    %c0_i32 = arith.constant 0 : i32
    %c0_i32_0 = arith.constant 0 : i32
    return %arg0, %arg1, %c0_i32 : i32, i32, i32
  }
}

</mosaic_0001>

<bundles_post_ra>
// kernel: tpu_custom_call.1
= control target key start
LH: loop header
LB: loop body
LE: loop exit
PB: predicated region body
PF: predicated region fallthrough
CT: control target
= control target key end

     0   :  { %8 = vsyncpa [#allocation3], 0  ;;  %s6427_s0 = inlined_call_operand.vmem [shape: s32[2,32,1], index: 0, kind: input, shape index: {}]   ;;  %s6428_s1 = inlined_call_operand.vmem [shape: s32[2,4,8], index: 1, kind: input, shape index: {}]   ;;  %s6429_s2 = inlined_call_operand.vmem [shape: f32[4,17,128], index: 2, kind: input, shape index: {}]   ;;  %s6430_s3 = inlined_call_operand.hbm [shape: f32[2,256,128], index: 3, kind: output, shape index: {}]  }
   0x1   :  { %10 = vsyncpa [#allocation3 + $0x1], 0  ;;  %s5255_s12 = smov 0   ;;  %s5257_s13 = smov 0  }
   0x2   :  { %s5259_s14 = smov 0   ;;  %s5261_s15 = smov 0  }
   0x3   :  { %s5263_s16 = smov 0   ;;  %s5265_s17 = smov 0  }
   0x4   :  { %s5267_s18 = smov 0   ;;  %s5269_s19 = smov 0  }
   0x5 LB: > { %s3920_s20 = sadd.s32 4294967295, %s5228_s19   ;;  %s3921_s21 = sadd.s32 4294967294, %s5228_s19   ;;  %s5228_s19 = sphi %s5269_s19, %s16_s19   ;;  %s5224_s18 = sphi %s5267_s18, %s6501_s18   ;;  %s5220_s17 = sphi %s5265_s17, %s6500_s17   ;;  %s5216_s16 = sphi %s5263_s16, %s6499_s16   ;;  %s5212_s15 = sphi %s5261_s15, %s6498_s15   ;;  %s5208_s14 = sphi %s5259_s14, %s6497_s14   ;;  %s5204_s13 = sphi %s5257_s13, %s6496_s13   ;;  %s5200_s12 = sphi %s5255_s12, %s6495_s12  }
   0x6   : > { %s25_s22 = sadd.s32 1, %s5220_s17  ;;  %s28_s23 = sadd.s32 1, %s5224_s18 }
   0x7   : > { %p26_p0 = scmp.ge.s32.totalorder %s25_s22, 4  ;;  %p120_p1 = scmp.ne.s32.totalorder %s5208_s14, %s5204_s13 }
   0x8   : > { %p121_p2 = scmp.eq.s32.totalorder %s3920_s20, 7  ;;  %p126_p5 = scmp.ne.s32.totalorder %s5204_s13, %s5200_s12 }
   0x9   : > { %s6503_s22 = smov (%p26_p0, %s25_s22), 0  ;;  %s6505_s23 = smov (!%p26_p0, %s28_s23), %s5224_s18 }
   0xa   : > { %s106_s24 = ssub.s32 %s5220_s17, %s6503_s22  ;;  %p5306_p3 = por %p121_p2, %p120_p1 }
   0xb   : > { %p30_p4 = scmp.ge.s32.totalorder %s6505_s23, 2  ;;  %p127_p6 = scmp.eq.s32.totalorder %s3921_s21, 7 }
   0xc   : > { %p3924_p7 = scmp.ge.s32.totalorder %s5228_s19, 1  ;;  %p163_p9 = scmp.lt.s32.totalorder %s5228_s19, 9 }
   0xd   : > { %s6507_s23 = smov (%p30_p4, %s6505_s23), 0  ;;  %p5315_p8 = por %p127_p6, %p126_p5 }
   0xe   : > { %s105_s27 = ssub.s32 %s5224_s18, %s6507_s23  ;;  %s110_s28 = sadd.s32 1, %s5208_s14 }
   0xf   : > { %s107_s29 = sor.u32 %s106_s24, %s105_s27  ;;  %p164_p10 = pnand %p3924_p7, %p163_p9 }
  0x10   : > { %p108_p11 = scmp.eq.s32.totalorder %s107_s29, 0 }
  0x11   : > { %167 = sbr.rel (%p164_p10) target bundleno = 731 (0x2db), region = 32 }
  0x12   : > { %s5324_s30 = scalar_select %p108_p11, %s5208_s14, %s110_s28  }
  0x18   : > { %p191_p12 = scmp.lt.s32.totalorder %s5216_s16, 1  ;;  %v5230_v0 = vmov 0   ;;  %s3929_s5 = sshll.u32 %s5212_s15, 3  ;;  %v218_v2 = vlaneseq  ;;  %v3950_v19 = vld [vmem:[%s6429_s2 + $0x18] sm:$0xff]  ;;  %v3951_v20 = vld [vmem:[%s6429_s2 + $0x20] sm:$0xff]  ;;  %v4011_v25 = vld [vmem:[%s6429_s2 + $0x30] sm:$0xff] }
  0x19   : > { %5133 = vset.pattern.permute.xlu0 %v5230_v0  ;;  %v428_v24 = vand.u32 4294901760, %v3950_v19  ;;  %v431_v26 = vand.u32 4294901760, %v3951_v20  ;;  %v4012_v27 = vld [vmem:[%s6429_s2 + $0x38] sm:$0xff]  ;;  %v3952_v29 = vld [vmem:[%s6429_s2 + $0x28] sm:$0x1]  ;;  %v2123_v34 = vand.u32 4294901760, %v4011_v25 }
  0x1a   : > { %s192_s4 = scalar_select %p191_p12, %s5216_s16, 1  ;;  %v5342_v8 = vshrl.u32 %v218_v2, 7  ;;  %v4013_v30 = vld [vmem:[%s6429_s2 + $0x40] sm:$0x1]  ;;  %v2126_v35 = vand.u32 4294901760, %v4012_v27  ;;  %vm423_vm2 = vcmask 1040384  }
  0x1b   : > { %v5390_v33 = vpack.c.bf16 %v431_v26, %v428_v24  ;;  %v5394_v37 = vsel %vm423_vm2, %v3952_v29, 0  ;;  %v5397_v38 = vsel %vm423_vm2, %v4013_v30, 0  ;;  %v5429_v51 = vsub.f32 %v3950_v19, %v428_v24  ;;  %s188_s21 = sand.u32 1, %s5204_s13   ;;  %s4077_s27 = sshll.u32 %s5216_s16, 5 }
  0x1c   : > { %s4081_s6 = sshll.u32 %s192_s4, 5  ;;  %s3928_s11 = sshll.u32 %s192_s4, 2  ;;  %v5345_v13 = vsub.s32 0, %v5342_v8  ;;  %v5356_v18 = vsub.s32 1, %v5342_v8  ;;  %v5369_v23 = vsub.s32 2, %v5342_v8  ;;  %v5378_v28 = vsub.s32 3, %v5342_v8 }
  0x1d   : > { %s195_s9 = scalar_lea.vmem %s6427_s0, %s4081_s6  ;;  %s5337_s24 = scalar_lea.vmem %s6428_s1, %s3928_s11  ;;  %v5401_v40 = vsub.s32 4, %v5342_v8  ;;  %4779 = vmatprep.subr.bf16.mxu1 %v5390_v33  ;;  %v5404_v41 = vpack.c.bf16 %v2126_v35, %v2123_v34  ;;  %v5407_v42 = vand.u32 4294901760, %v5394_v37  ;;  %v5415_v45 = vand.u32 4294901760, %v5397_v38 }
  0x1e   : > { %s202_s10 = scalar_lea.vmem %s195_s9, %s3929_s5  ;;  %v3940_v3 = vld [vmem:[%s5337_s24 + $0x1] ss:$0 sm:$0xff]  ;;  %v4001_v4 = vld [vmem:[%s5337_s24 + $0x2] ss:$0 sm:$0xff]  ;;  %v3930_v36 = vld [vmem:[%s5337_s24] ss:$0 sm:$0xff]  ;;  %4781 = vmatpush3.bf16.msra.mxu1 %v5390_v33  ;;  %v5431_v52 = vsub.f32 %v3951_v20, %v431_v26  ;;  %v5433_v53 = vsub.f32 %v4011_v25, %v2123_v34  ;;  %v5435_v55 = vsub.f32 %v4012_v27, %v2126_v35  ;;  %s3827_s29 = sadd.s32 %s4077_s27, %s3929_s5 }
  0x1f   : > { %v203_v1 = vld [vmem:[%s202_s10] sm:$0xff]  ;;  %4827 = vmatprep.subr.bf16.mxu0 %v5404_v41  ;;  %4350 = vmatprep.subr.mxu1 %v5407_v42  ;;  %v5424_v50 = vsub.s32 5, %v5342_v8  ;;  %v578_v57 = vand.u32 4294901760, %v5429_v51  ;;  %v264_v61 = vsub.s32 6, %v5342_v8  ;;  %vm398_vm5 = vcmask 138240   ;;  %s4078_s16 = sshll.u32 %s3827_s29, 7 }
  0x20   : > { %206 = vperm.xlu0 %5133, %v203_v1   ;;  %v4038_v39 = vld [vmem:[%s5337_s24 + $0x3] ss:$0 sm:$0xff]  ;;  %4829 = vmatpush3.bf16.msra.mxu0 %v5404_v41  ;;  %v585_v58 = vand.u32 4294901760, %v5431_v52  ;;  %v2273_v59 = vand.u32 4294901760, %v5433_v53  ;;  %v2280_v62 = vand.u32 4294901760, %v5435_v55  ;;  %v5474_v27 = vpack.c.bf16 %v5431_v52, %v5429_v51  ;;  %s3925_s24 = sshll.u32 %s188_s21, 6  ;;  %s6366_s15 = scalar_lea.hbm %s6430_s3, %s4078_s16 }
  0x21   : > { %4566 = vmatprep.subr.mxu0 %v5415_v45  ;;  %v579_v0 = vsub.f32 %v5429_v51, %v578_v57  ;;  %v5478_v29 = vpack.c.bf16 %v5435_v55, %v5433_v53  ;;  %v5231_v51 = vmov 0.0   ;;  %s6353_s28 = scalar_lea.vmem [#allocation2], %s3925_s24  ;;  %s6375_s5 = scalar_lea.sflag [#allocation3], %s188_s21 }
  0x22   : > { %4351 = vmatpush3.msra.mxu1 %v5407_v42  ;;  %v586_v1 = vsub.f32 %v5431_v52, %v585_v58  ;;  %s3830_s4 = sshll.u32 %s6353_s28, 4  ;;  %s5232_s9 = smov [#allocation2]   ;;  %s6369_s4 = int_to_ptr.vmem [resolvable:$true] %s3830_s4 }
  0x23   : > { %s5134_s8 = scalar_lea.vmem %s6369_s4, 1024  ;;  %s5138_s10 = sshll.u32 %s5232_s9, 4  ;;  %s5139_s10 = int_to_ptr.vmem [resolvable:$false] %s5138_s10 }
  0x24   : > { %4567 = vmatpush3.msra.mxu0 %v5415_v45  ;;  %p5135_p13 = scmp.ne.s32.totalorder %s6369_s4, %s5134_s8  ;;  %s5140_s11 = scalar_lea.vmem %s5139_s10, 2048 }
  0x25   : > { %p5141_p2 = scmp.lt.s32.totalorder %s6369_s4, %s5139_s10  ;;  %p5142_p4 = scmp.lt.s32.totalorder %s5140_s11, %s5134_s8 }
  0x26   : > { %p5136_p0 = pnand %p5135_p13, %p5306_p3 }
  0x27   : > { %p5143_p5 = por %p5142_p4, %p5141_p2 }
  0x28   : > { %p5137_p1 = pneg %p5136_p0 }
  0x2a   : > { %p5144_p6 = pnand %p5143_p5, %p5137_p1 }
  0x9f   : > { %v207_v5 = vpop.permute.xlu0 %206 }
  0xa0   : > { %v308_v6 = vsub.s32 %v207_v5, %v3940_v3  ;;  %v2005_v7 = vsub.s32 %v207_v5, %v4001_v4  ;;  %v212_v46 = vsub.s32 %v207_v5, %v3930_v36  ;;  %v2908_v47 = vsub.s32 %v207_v5, %v4038_v39 }
  0xa1   : > { %v2274_v3 = vsub.f32 %v5433_v53, %v2273_v59  ;;  %v2281_v5 = vsub.f32 %v5435_v55, %v2280_v62 }
  0xa2   : > { %v310_v9 = vsub.s32 0, %v308_v6  ;;  %v2007_v10 = vsub.s32 0, %v2005_v7  ;;  %v214_v54 = vsub.s32 0, %v212_v46  ;;  %v2910_v56 = vsub.s32 0, %v2908_v47 }
  0xa4   : > { %v3941_v11 = vmin.u32 %v310_v9, %v308_v6  ;;  %v4002_v12 = vmin.u32 %v2007_v10, %v2005_v7  ;;  %v3931_v4 = vmin.u32 %v214_v54, %v212_v46  ;;  %v4039_v6 = vmin.u32 %v2910_v56, %v2908_v47 }
  0xa5   : > { %v580_v7 = vand.u32 4294901760, %v579_v0  ;;  %v587_v9 = vand.u32 4294901760, %v586_v1  ;;  %v2275_v10 = vand.u32 4294901760, %v2274_v3  ;;  %v5503_v46 = vand.u32 127, %v218_v2 }
  0xa6   : > { %vm312_vm0 = vcmp.lt.s32.totalorder %v3941_v11, 16  ;;  %vm2009_vm1 = vcmp.lt.s32.totalorder %v4002_v12, 16  ;;  %vm216_vm3 = vcmp.lt.s32.totalorder %v3931_v4, 16  ;;  %vm2912_vm4 = vcmp.lt.s32.totalorder %v4039_v6, 16 }
  0xa7   : > { %v5347_v14 = vsel %vm312_vm0, %v3941_v11, 16  ;;  %v5349_v15 = vsel %vm2009_vm1, %v4002_v12, 16  ;;  %v2282_v11 = vand.u32 4294901760, %v2281_v5  ;;  %v5462_v19 = vpack.c.bf16 %v587_v9, %v580_v7 }
  0xa8   : > { %v2014_v16 = vrot.slane %v5349_v15, %v5345_v13  ;;  %v317_v17 = vrot.slane %v5347_v14, %v5345_v13  ;;  %v324_v21 = vrot.slane %v5347_v14, %v5356_v18  ;;  %v2021_v22 = vrot.slane %v5349_v15, %v5356_v18 }
  0xa9   : > { %v331_v31 = vrot.slane %v5347_v14, %v5369_v23  ;;  %v2028_v32 = vrot.slane %v5349_v15, %v5369_v23  ;;  %v338_v43 = vrot.slane %v5347_v14, %v5378_v28  ;;  %v2035_v44 = vrot.slane %v5349_v15, %v5378_v28  ;;  %4783 = vmatprep.subr.bf16.mxu1 %v5462_v19 }
  0xaa   : > { %2016 = vbcast.lane.b32.xlu1 %v2014_v16, 256  ;;  %319 = vbcast.lane.b32.xlu0 %v317_v17, 256  ;;  %v345_v48 = vrot.slane %v5347_v14, %v5401_v40  ;;  %v2042_v49 = vrot.slane %v5349_v15, %v5401_v40  ;;  %v352_v60 = vrot.slane %v5347_v14, %v5424_v50  ;;  %v271_v17 = vsub.s32 7, %v5342_v8 }
  0xab   : > { %v2049_v63 = vrot.slane %v5349_v15, %v5424_v50  ;;  %v359_v12 = vrot.slane %v5347_v14, %v264_v61  ;;  %v2056_v16 = vrot.slane %v5349_v15, %v264_v61  ;;  %v5464_v20 = vpack.c.bf16 %v2282_v11, %v2275_v10 }
  0xac   : > { %v217_v24 = vsel %vm216_vm3, %v3931_v4, 16  ;;  %v2913_v25 = vsel %vm2912_vm4, %v4039_v6, 16  ;;  %v5507_v47 = vsub.f32 %v5394_v37, %v5407_v42 }
  0xad   : > { %4831 = vmatprep.subr.bf16.mxu0 %v5464_v20  ;;  %v2917_v8 = vrot.slane %v2913_v25, %v5345_v13  ;;  %v223_v26 = vrot.slane %v217_v24, %v5345_v13  ;;  %v2931_v30 = vrot.slane %v2913_v25, %v5369_v23  ;;  %v237_v13 = vrot.slane %v217_v24, %v5369_v23 }
  0xae   : > { %326 = vbcast.lane.b32.xlu1 %v324_v21, 256  ;;  %2023 = vbcast.lane.b32.xlu0 %v2021_v22, 256  ;;  %v366_v21 = vrot.slane %v5347_v14, %v271_v17  ;;  %v2063_v22 = vrot.slane %v5349_v15, %v271_v17  ;;  %v2924_v14 = vrot.slane %v2913_v25, %v5356_v18  ;;  %v5526_v53 = vand.u32 4294901760, %v5507_v47 }
  0xaf   : > { %v230_v15 = vrot.slane %v217_v24, %v5356_v18  ;;  %v2945_v34 = vrot.slane %v2913_v25, %v5401_v40  ;;  %v251_v35 = vrot.slane %v217_v24, %v5401_v40  ;;  %v2952_v18 = vrot.slane %v2913_v25, %v5424_v50 }
  0xb0   : > { %v258_v36 = vrot.slane %v217_v24, %v5424_v50  ;;  %v2959_v23 = vrot.slane %v2913_v25, %v264_v61  ;;  %v265_v39 = vrot.slane %v217_v24, %v264_v61  ;;  %v5494_v40 = vpack.c.bf16 %v585_v58, %v578_v57 }
  0xb1   : > { %v593_v1 = vsub.f32 %v5507_v47, %v5526_v53 }
  0xb2   : > { %333 = vbcast.lane.b32.xlu1 %v331_v31, 256  ;;  %2030 = vbcast.lane.b32.xlu0 %v2028_v32, 256  ;;  %v2938_v31 = vrot.slane %v2913_v25, %v5378_v28  ;;  %v244_v32 = vrot.slane %v217_v24, %v5378_v28  ;;  %v272_v28 = vrot.slane %v217_v24, %v271_v17 }
  0xb6   : > { %340 = vbcast.lane.b32.xlu1 %v338_v43, 256  ;;  %2037 = vbcast.lane.b32.xlu0 %v2035_v44, 256  ;;  %v2966_v43 = vrot.slane %v2913_v25, %v271_v17  ;;  %v5500_v44 = vpack.c.bf16 %v2280_v62, %v2273_v59 }
  0xba   : > { %347 = vbcast.lane.b32.xlu1 %v345_v48, 256  ;;  %2044 = vbcast.lane.b32.xlu0 %v2042_v49, 256  ;;  %v5511_v48 = vsub.f32 %v5397_v38, %v5415_v45 }
  0xbc   : > { %v5529_v54 = vand.u32 4294901760, %v5511_v48 }
  0xbe   : > { %354 = vbcast.lane.b32.xlu1 %v352_v60, 256  ;;  %2051 = vbcast.lane.b32.xlu0 %v2049_v63, 256  ;;  %v2288_v3 = vsub.f32 %v5511_v48, %v5529_v54 }
  0xc2   : > { %361 = vbcast.lane.b32.xlu1 %v359_v12, 256  ;;  %2058 = vbcast.lane.b32.xlu0 %v2056_v16, 256 }
  0xc6   : > { %368 = vbcast.lane.b32.xlu1 %v366_v21, 256  ;;  %2065 = vbcast.lane.b32.xlu0 %v2063_v22, 256 }
  0xca   : > { %2919 = vbcast.lane.b32.xlu0 %v2917_v8, 256  ;;  %225 = vbcast.lane.b32.xlu1 %v223_v26, 256 }
  0xce   : > { %2926 = vbcast.lane.b32.xlu0 %v2924_v14, 256  ;;  %232 = vbcast.lane.b32.xlu1 %v230_v15, 256 }
  0xd2   : > { %2933 = vbcast.lane.b32.xlu0 %v2931_v30, 256  ;;  %239 = vbcast.lane.b32.xlu1 %v237_v13, 256  ;;  %v594_v30 = vand.u32 4294901760, %v593_v1  ;;  %v2289_v13 = vand.u32 4294901760, %v2288_v3 }
  0xd6   : > { %2940 = vbcast.lane.b32.xlu0 %v2938_v31, 256  ;;  %246 = vbcast.lane.b32.xlu1 %v244_v32, 256 }
  0xda   : > { %2947 = vbcast.lane.b32.xlu0 %v2945_v34, 256  ;;  %253 = vbcast.lane.b32.xlu1 %v251_v35, 256 }
  0xde   : > { %2954 = vbcast.lane.b32.xlu0 %v2952_v18, 256  ;;  %260 = vbcast.lane.b32.xlu1 %v258_v36, 256 }
  0xe2   : > { %2961 = vbcast.lane.b32.xlu0 %v2959_v23, 256  ;;  %267 = vbcast.lane.b32.xlu1 %v265_v39, 256 }
  0xe6   : > { %2968 = vbcast.lane.b32.xlu0 %v2966_v43, 256  ;;  %274 = vbcast.lane.b32.xlu1 %v272_v28, 256 }
 0x11c   : > { %v2017_v49 = vpop.permute.xlu1 %2016  ;;  %v320_v50 = vpop.permute.xlu0 %319 }
 0x11d   : > { %vm2067_vm6 = vcmp.eq.s32.totalorder %v2017_v49, %v5503_v46  ;;  %vm370_vm7 = vcmp.eq.s32.totalorder %v320_v50, %v5503_v46 }
 0x11e   : > { %v5516_v52 = vsel %vm2067_vm6, 1.0, %v5231_v51  ;;  %v5519_v2 = vsel %vm370_vm7, 1.0, %v5231_v51 }
 0x11f   : > { %v2096_v37 = vsel %vm398_vm5, %v5516_v52, 0  ;;  %v400_v38 = vsel %vm398_vm5, %v5519_v2, 0 }
 0x120   : > { %v327_v55 = vpop.permute.xlu1 %326  ;;  %v2024_v56 = vpop.permute.xlu0 %2023  ;;  %v5531_v57 = vsub.f32 %v2096_v37, %v2096_v37  ;;  %v5533_v58 = vsub.f32 %v400_v38, %v400_v38 }
 0x121   : > { %vm371_vm8 = vcmp.eq.s32.totalorder %v327_v55, %v5503_v46  ;;  %vm2068_vm9 = vcmp.eq.s32.totalorder %v2024_v56, %v5503_v46 }
 0x122   : > { %v5538_v59 = vsel %vm371_vm8, 1.0, %v5231_v51  ;;  %v5541_v60 = vsel %vm2068_vm9, 1.0, %v5231_v51  ;;  %v2192_v61 = vand.u32 4294901760, %v5531_v57  ;;  %v497_v62 = vand.u32 4294901760, %v5533_v58 }
 0x123   : > { %v403_v63 = vsel %vm398_vm5, %v5538_v59, 0  ;;  %v2099_v0 = vsel %vm398_vm5, %v5541_v60, 0 }
 0x124   : > { %v5553_v4 = vsub.f32 %v403_v63, %v403_v63  ;;  %v5555_v5 = vsub.f32 %v2099_v0, %v2099_v0  ;;  %v334_v6 = vpop.permute.xlu1 %333  ;;  %v2031_v7 = vpop.permute.xlu0 %2030  ;;  %v2193_v9 = vsub.f32 %v5531_v57, %v2192_v61  ;;  %v498_v10 = vsub.f32 %v5533_v58, %v497_v62 }
 0x125   : > { %vm372_vm10 = vcmp.eq.s32.totalorder %v334_v6, %v5503_v46  ;;  %vm2069_vm11 = vcmp.eq.s32.totalorder %v2031_v7, %v5503_v46 }
 0x126   : > { %v5566_v11 = vsel %vm372_vm10, 1.0, %v5231_v51  ;;  %v5569_v12 = vsel %vm2069_vm11, 1.0, %v5231_v51  ;;  %v2194_v16 = vand.u32 4294901760, %v2193_v9  ;;  %v499_v17 = vand.u32 4294901760, %v498_v10 }
 0x127   : > { %v406_v21 = vsel %vm398_vm5, %v5566_v11, 0  ;;  %v2102_v22 = vsel %vm398_vm5, %v5569_v12, 0  ;;  %v507_v24 = vand.u32 4294901760, %v5553_v4  ;;  %v2202_v25 = vand.u32 4294901760, %v5555_v5 }
 0x128   : > { %v5577_v8 = vsub.f32 %v406_v21, %v406_v21  ;;  %v5579_v26 = vsub.f32 %v2102_v22, %v2102_v22  ;;  %4568 = vmatprep.mubr.f32.mxu0 %v2194_v16  ;;  %v341_v14 = vpop.permute.xlu1 %340  ;;  %4352 = vmatprep.mubr.f32.mxu1 %v499_v17  ;;  %v2038_v15 = vpop.permute.xlu0 %2037 }
 0x129   : > { %vm373_vm12 = vcmp.eq.s32.totalorder %v341_v14, %v5503_v46  ;;  %vm2070_vm13 = vcmp.eq.s32.totalorder %v2038_v15, %v5503_v46  ;;  %v508_v31 = vsub.f32 %v5553_v4, %v507_v24  ;;  %v2203_v32 = vsub.f32 %v5555_v5, %v2202_v25 }
 0x12a   : > { %v5590_v34 = vsel %vm373_vm12, 1.0, %v5231_v51  ;;  %v5593_v35 = vsel %vm2070_vm13, 1.0, %v5231_v51  ;;  %v6442_v18 = vand.u32 4294901760, %v5577_v8  ;;  %v6438_v36 = vand.u32 4294901760, %v5579_v26 }
 0x12b   : > { %v409_v23 = vsel %vm398_vm5, %v5590_v34, 0  ;;  %v2105_v39 = vsel %vm398_vm5, %v5593_v35, 0  ;;  %v509_v43 = vand.u32 4294901760, %v508_v31  ;;  %v2204_v28 = vand.u32 4294901760, %v2203_v32 }
 0x12c   : > { %v5601_v49 = vsub.f32 %v409_v23, %v409_v23  ;;  %v5603_v50 = vsub.f32 %v2105_v39, %v2105_v39  ;;  %v348_v37 = vpop.permute.xlu1 %347  ;;  %v2045_v38 = vpop.permute.xlu0 %2044  ;;  %v518_v55 = vsub.f32 %v5577_v8, %v6442_v18  ;;  %v2213_v56 = vsub.f32 %v5579_v26, %v6438_v36 }
 0x12d   : > { %vm374_vm14 = vcmp.eq.s32.totalorder %v348_v37, %v5503_v46  ;;  %4353 = vmatmul.mubr.f32.vlgmr.msra.gmra.mrb[0].mxu1 %v509_v43  ;;  %4569 = vmatmul.mubr.f32.vlgmr.msra.gmra.mrb[0].mxu0 %v2204_v28  ;;  %vm2071_vm15 = vcmp.eq.s32.totalorder %v2045_v38, %v5503_v46 }
 0x12e   : > { %v5614_v63 = vsel %vm374_vm14, 1.0, %v5231_v51  ;;  %v5617_v0 = vsel %vm2071_vm15, 1.0, %v5231_v51  ;;  %v519_v1 = vand.u32 4294901760, %v518_v55  ;;  %v2214_v3 = vand.u32 4294901760, %v2213_v56  ;;  %4785 = vmatpush3.bf16.msra.mxu1 %v5462_v19  ;;  %4833 = vmatpush3.bf16.msra.mxu0 %v5464_v20 }
 0x12f   : > { %v412_v6 = vsel %vm398_vm5, %v5614_v63, 0  ;;  %v2108_v7 = vsel %vm398_vm5, %v5617_v0, 0  ;;  %v6436_v9 = vand.u32 4294901760, %v5601_v49  ;;  %v6435_v10 = vand.u32 4294901760, %v5603_v50  ;;  %4368 = vmatprep.subr.mxu1 %v594_v30  ;;  %4584 = vmatprep.subr.mxu0 %v2289_v13 }
 0x130   : > { %v5627_v16 = vsub.f32 %v412_v6, %v412_v6  ;;  %v5629_v17 = vsub.f32 %v2108_v7, %v2108_v7  ;;  %v355_v21 = vpop.permute.xlu1 %354  ;;  %4355 = vmatprep.mubr.f32.mxu1 %v519_v1  ;;  %4571 = vmatprep.mubr.f32.mxu0 %v2214_v3  ;;  %v2052_v19 = vpop.permute.xlu0 %2051 }
 0x131   : > { %vm375_vm0 = vcmp.eq.s32.totalorder %v355_v21, %v5503_v46  ;;  %vm2072_vm1 = vcmp.eq.s32.totalorder %v2052_v19, %v5503_v46  ;;  %v528_v20 = vsub.f32 %v5601_v49, %v6436_v9  ;;  %v2223_v22 = vsub.f32 %v5603_v50, %v6435_v10 }
 0x132   : > { %v5640_v14 = vsel %vm375_vm0, 1.0, %v5231_v51  ;;  %v5643_v15 = vsel %vm2072_vm1, 1.0, %v5231_v51  ;;  %v6434_v31 = vand.u32 4294901760, %v5627_v16  ;;  %v6433_v32 = vand.u32 4294901760, %v5629_v17  ;;  %4369 = vmatpush3.msra.mxu1 %v594_v30  ;;  %4585 = vmatpush3.msra.mxu0 %v2289_v13 }
 0x133   : > { %v415_v23 = vsel %vm398_vm5, %v5640_v14, 0  ;;  %v2111_v39 = vsel %vm398_vm5, %v5643_v15, 0  ;;  %v529_v43 = vand.u32 4294901760, %v528_v20  ;;  %v2224_v28 = vand.u32 4294901760, %v2223_v22  ;;  %4787 = vmatprep.subr.bf16.mxu1 %v5474_v27  ;;  %4835 = vmatprep.subr.bf16.mxu0 %v5478_v29 }
 0x134   : > { %v5653_v37 = vsub.f32 %v415_v23, %v415_v23  ;;  %v5655_v38 = vsub.f32 %v2111_v39, %v2111_v39  ;;  %v362_v55 = vpop.permute.xlu1 %361  ;;  %v2059_v56 = vpop.permute.xlu0 %2058  ;;  %v538_v30 = vsub.f32 %v5627_v16, %v6434_v31  ;;  %v2233_v13 = vsub.f32 %v5629_v17, %v6433_v32 }
 0x135   : > { %vm376_vm3 = vcmp.eq.s32.totalorder %v362_v55, %v5503_v46  ;;  %4356 = vmatmul.mubr.f32.gmra.mrb[2].mxu1 %v529_v43  ;;  %4572 = vmatmul.mubr.f32.gmra.mrb[2].mxu0 %v2224_v28  ;;  %vm2073_vm4 = vcmp.eq.s32.totalorder %v2059_v56, %v5503_v46 }
 0x136   : > { %v5666_v1 = vsel %vm376_vm3, 1.0, %v5231_v51  ;;  %v5669_v3 = vsel %vm2073_vm4, 1.0, %v5231_v51  ;;  %v539_v6 = vand.u32 4294901760, %v538_v30  ;;  %v2234_v7 = vand.u32 4294901760, %v2233_v13 }
 0x137   : > { %v418_v21 = vsel %vm398_vm5, %v5666_v1, 0  ;;  %v2114_v19 = vsel %vm398_vm5, %v5669_v3, 0  ;;  %v6431_v20 = vand.u32 4294901760, %v5653_v37  ;;  %v6432_v22 = vand.u32 4294901760, %v5655_v38 }
 0x138   : > { %v5677_v23 = vsub.f32 %v418_v21, %v418_v21  ;;  %v5679_v39 = vsub.f32 %v2114_v19, %v2114_v19  ;;  %v369_v43 = vpop.permute.xlu1 %368  ;;  %4358 = vmatprep.mubr.f32.mxu1 %v539_v6  ;;  %4574 = vmatprep.mubr.f32.mxu0 %v2234_v7  ;;  %v2066_v28 = vpop.permute.xlu0 %2065 }
 0x139   : > { %vm377_vm6 = vcmp.eq.s32.totalorder %v369_v43, %v5503_v46  ;;  %vm2074_vm7 = vcmp.eq.s32.totalorder %v2066_v28, %v5503_v46  ;;  %v548_v55 = vsub.f32 %v5653_v37, %v6431_v20  ;;  %v2243_v56 = vsub.f32 %v5655_v38, %v6432_v22 }
 0x13a   : > { %v5690_v30 = vsel %vm377_vm6, 1.0, %v5231_v51  ;;  %v5693_v13 = vsel %vm2074_vm7, 1.0, %v5231_v51  ;;  %v6437_v6 = vand.u32 4294901760, %v5677_v23  ;;  %v6439_v7 = vand.u32 4294901760, %v5679_v39 }
 0x13b   : > { %v421_v21 = vsel %vm398_vm5, %v5690_v30, 0  ;;  %v2117_v19 = vsel %vm398_vm5, %v5693_v13, 0  ;;  %v549_v43 = vand.u32 4294901760, %v548_v55  ;;  %v2244_v28 = vand.u32 4294901760, %v2243_v56 }
 0x13c   : > { %v5701_v20 = vsub.f32 %v421_v21, %v421_v21  ;;  %v5703_v22 = vsub.f32 %v2117_v19, %v2117_v19  ;;  %v2920_v32 = vpop.permute.xlu0 %2919  ;;  %v226_v31 = vpop.permute.xlu1 %225  ;;  %v558_v10 = vsub.f32 %v5677_v23, %v6437_v6  ;;  %v2253_v9 = vsub.f32 %v5679_v39, %v6439_v7 }
 0x13d   : > { %4359 = vmatmul.mubr.f32.gmra.mrb[4].mxu1 %v549_v43  ;;  %4575 = vmatmul.mubr.f32.gmra.mrb[4].mxu0 %v2244_v28  ;;  %vm2970_vm8 = vcmp.eq.s32.totalorder %v2920_v32, %v5503_v46  ;;  %vm276_vm9 = vcmp.eq.s32.totalorder %v226_v31, %v5503_v46 }
 0x13e   : > { %v5714_v55 = vsel %vm2970_vm8, 1.0, %v5231_v51  ;;  %v5717_v56 = vsel %vm276_vm9, 1.0, %v5231_v51  ;;  %v559_v21 = vand.u32 4294901760, %v558_v10  ;;  %v2254_v19 = vand.u32 4294901760, %v2253_v9 }
 0x13f   : > { %v6441_v6 = vand.u32 4294901760, %v5701_v20  ;;  %v6440_v36 = vand.u32 4294901760, %v5703_v22 }
 0x140   : > { %4361 = vmatprep.mubr.f32.mxu1 %v559_v21  ;;  %4577 = vmatprep.mubr.f32.mxu0 %v2254_v19  ;;  %v2927_v43 = vpop.permute.xlu0 %2926  ;;  %v233_v28 = vpop.permute.xlu1 %232 }
 0x141   : > { %vm2971_vm10 = vcmp.eq.s32.totalorder %v2927_v43, %v5503_v46  ;;  %vm277_vm11 = vcmp.eq.s32.totalorder %v233_v28, %v5503_v46  ;;  %v568_v31 = vsub.f32 %v5701_v20, %v6441_v6  ;;  %v2263_v9 = vsub.f32 %v5703_v22, %v6440_v36 }
 0x142   : > { %v5730_v10 = vsel %vm2971_vm10, 1.0, %v5231_v51  ;;  %v5733_v32 = vsel %vm277_vm11, 1.0, %v5231_v51 }
 0x143   : > { %v569_v21 = vand.u32 4294901760, %v568_v31  ;;  %v2264_v19 = vand.u32 4294901760, %v2263_v9 }
 0x144   : > { %v2934_v7 = vpop.permute.xlu0 %2933  ;;  %v240_v43 = vpop.permute.xlu1 %239 }
 0x145   : > { %4362 = vmatmul.mubr.f32.gmra.mrb[6].mxu1 %v569_v21  ;;  %4578 = vmatmul.mubr.f32.gmra.mrb[6].mxu0 %v2264_v19  ;;  %vm2972_vm12 = vcmp.eq.s32.totalorder %v2934_v7, %v5503_v46  ;;  %vm278_vm13 = vcmp.eq.s32.totalorder %v240_v43, %v5503_v46 }
 0x146   : > { %v5738_v28 = vsel %vm2972_vm12, 1.0, %v5231_v51  ;;  %v5741_v36 = vsel %vm278_vm13, 1.0, %v5231_v51  ;;  %4370 = vmatprep.mubr.msk.f32.mxu1 %vm398_vm5, %v5519_v2  ;;  %4586 = vmatprep.mubr.msk.f32.mxu0 %vm398_vm5, %v5516_v52 }
 0x148   : > { %v2941_v31 = vpop.permute.xlu0 %2940  ;;  %v247_v9 = vpop.permute.xlu1 %246 }
 0x149   : > { %4371 = vmatmul.mubr.msk.f32.vlgmr.msra.gmra.mrb[0].mxu1 %vm398_vm5, %v5538_v59  ;;  %4587 = vmatmul.mubr.msk.f32.vlgmr.msra.gmra.mrb[0].mxu0 %vm398_vm5, %v5541_v60  ;;  %vm2973_vm14 = vcmp.eq.s32.totalorder %v2941_v31, %v5503_v46  ;;  %vm279_vm15 = vcmp.eq.s32.totalorder %v247_v9, %v5503_v46 }
 0x14a   : > { %4789 = vmatpush3.bf16.msra.mxu1 %v5474_v27  ;;  %4837 = vmatpush3.bf16.msra.mxu0 %v5478_v29  ;;  %v5756_v7 = vsel %vm2973_vm14, 1.0, %v5231_v51  ;;  %v5759_v21 = vsel %vm279_vm15, 1.0, %v5231_v51 }
 0x14b   : > { %4373 = vmatprep.mubr.msk.f32.mxu1 %vm398_vm5, %v5566_v11  ;;  %4589 = vmatprep.mubr.msk.f32.mxu0 %vm398_vm5, %v5569_v12 }
 0x14c   : > { %v2948_v19 = vpop.permute.xlu0 %2947  ;;  %v254_v43 = vpop.permute.xlu1 %253  ;;  %4386 = vmatprep.subr.mxu1 %v5507_v47  ;;  %4602 = vmatprep.subr.mxu0 %v5511_v48 }
 0x14d   : > { %4374 = vmatmul.mubr.msk.f32.gmra.mrb[2].mxu1 %vm398_vm5, %v5590_v34  ;;  %4590 = vmatmul.mubr.msk.f32.gmra.mrb[2].mxu0 %vm398_vm5, %v5593_v35  ;;  %vm2974_vm0 = vcmp.eq.s32.totalorder %v2948_v19, %v5503_v46  ;;  %vm280_vm1 = vcmp.eq.s32.totalorder %v254_v43, %v5503_v46 }
 0x14e   : > { %v5774_v27 = vsel %vm2974_vm0, 1.0, %v5231_v51  ;;  %v5777_v29 = vsel %vm280_vm1, 1.0, %v5231_v51  ;;  %4376 = vmatprep.mubr.msk.f32.mxu1 %vm398_vm5, %v5614_v63  ;;  %4592 = vmatprep.mubr.msk.f32.mxu0 %vm398_vm5, %v5617_v0 }
 0x14f   : > { %4387 = vmatpush3.msra.mxu1 %v5507_v47  ;;  %4603 = vmatpush3.msra.mxu0 %v5511_v48 }
 0x150   : > { %v2955_v31 = vpop.permute.xlu0 %2954  ;;  %v261_v9 = vpop.permute.xlu1 %260  ;;  %4791 = vmatprep.subr.bf16.mxu1 %v5390_v33  ;;  %4839 = vmatprep.subr.bf16.mxu0 %v5404_v41 }
 0x151   : > { %4377 = vmatmul.mubr.msk.f32.gmra.mrb[4].mxu1 %vm398_vm5, %v5640_v14  ;;  %4593 = vmatmul.mubr.msk.f32.gmra.mrb[4].mxu0 %vm398_vm5, %v5643_v15  ;;  %vm2975_vm3 = vcmp.eq.s32.totalorder %v2955_v31, %v5503_v46  ;;  %vm281_vm4 = vcmp.eq.s32.totalorder %v261_v9, %v5503_v46 }
 0x152   : > { %v5794_v47 = vsel %vm2975_vm3, 1.0, %v5231_v51  ;;  %v5797_v48 = vsel %vm281_vm4, 1.0, %v5231_v51  ;;  %4379 = vmatprep.mubr.msk.f32.mxu1 %vm398_vm5, %v5666_v1  ;;  %4595 = vmatprep.mubr.msk.f32.mxu0 %vm398_vm5, %v5669_v3 }
 0x154   : > { %v2962_v19 = vpop.permute.xlu0 %2961  ;;  %v268_v43 = vpop.permute.xlu1 %267 }
 0x155   : > { %4380 = vmatmul.mubr.msk.f32.gmra.mrb[6].mxu1 %vm398_vm5, %v5690_v30  ;;  %4596 = vmatmul.mubr.msk.f32.gmra.mrb[6].mxu0 %vm398_vm5, %v5693_v13  ;;  %vm2976_vm6 = vcmp.eq.s32.totalorder %v2962_v19, %v5503_v46  ;;  %vm282_vm7 = vcmp.eq.s32.totalorder %v268_v43, %v5503_v46 }
 0x156   : > { %v5810_v31 = vsel %vm2976_vm6, 1.0, %v5231_v51  ;;  %v5813_v9 = vsel %vm282_vm7, 1.0, %v5231_v51  ;;  %4388 = vmatprep.mubr.f32.mxu1 %v5533_v58  ;;  %4604 = vmatprep.mubr.f32.mxu0 %v5531_v57  ;;  %v6463_v57 = vand.u32 4294901760, %v5601_v49  ;;  %v6464_v58 = vand.u32 4294901760, %v5603_v50 }
 0x158   : > { %v2969_v6 = vpop.permute.xlu0 %2968  ;;  %v275_v18 = vpop.permute.xlu1 %274 }
 0x159   : > { %4389 = vmatmul.mubr.f32.vlgmr.msra.gmra.mrb[0].mxu1 %v5553_v4  ;;  %4605 = vmatmul.mubr.f32.vlgmr.msra.gmra.mrb[0].mxu0 %v5555_v5  ;;  %vm2977_vm8 = vcmp.eq.s32.totalorder %v2969_v6, %v5503_v46  ;;  %vm283_vm9 = vcmp.eq.s32.totalorder %v275_v18, %v5503_v46  ;;  %v6461_v46 = vand.u32 4294901760, %v5577_v8  ;;  %v6469_v4 = vand.u32 4294901760, %v5677_v23 }
 0x15a   : > { %4793 = vmatpush3.bf16.msra.mxu1 %v5390_v33  ;;  %4841 = vmatpush3.bf16.msra.mxu0 %v5404_v41  ;;  %v5824_v19 = vsel %vm2977_vm8, 1.0, %v5231_v51  ;;  %v5827_v43 = vsel %vm283_vm9, 1.0, %v5231_v51  ;;  %v6462_v51 = vand.u32 4294901760, %v5579_v26  ;;  %v6470_v5 = vand.u32 4294901760, %v5679_v39 }
 0x15b   : > { %4391 = vmatprep.mubr.f32.mxu1 %v5577_v8  ;;  %4607 = vmatprep.mubr.f32.mxu0 %v5579_v26  ;;  %v4048_v8 = vld [vmem:[%s6429_s2 + $0x48] sm:$0xff]  ;;  %v4049_v26 = vld [vmem:[%s6429_s2 + $0x50] sm:$0xff] }
 0x15c   : > { %4404 = vmatprep.subr.mxu1 %v5407_v42  ;;  %4620 = vmatprep.subr.mxu0 %v5415_v45 }
 0x15d   : > { %4392 = vmatmul.mubr.f32.gmra.mrb[2].mxu1 %v5601_v49  ;;  %4608 = vmatmul.mubr.f32.gmra.mrb[2].mxu0 %v5603_v50  ;;  %v3026_v50 = vand.u32 4294901760, %v4048_v8 }
 0x15e   : > { %4394 = vmatprep.mubr.f32.mxu1 %v5627_v16  ;;  %4610 = vmatprep.mubr.f32.mxu0 %v5629_v17 }
 0x15f   : > { %4405 = vmatpush3.msra.mxu1 %v5407_v42  ;;  %4621 = vmatpush3.msra.mxu0 %v5415_v45 }
 0x160   : > { %4795 = vmatprep.subr.bf16.mxu1 %v5494_v40  ;;  %4843 = vmatprep.subr.bf16.mxu0 %v5500_v44 }
 0x161   : > { %4395 = vmatmul.mubr.f32.gmra.mrb[4].mxu1 %v5653_v37  ;;  %4611 = vmatmul.mubr.f32.gmra.mrb[4].mxu0 %v5655_v38 }
 0x162   : > { %4397 = vmatprep.mubr.f32.mxu1 %v5677_v23  ;;  %4613 = vmatprep.mubr.f32.mxu0 %v5679_v39 }
 0x165   : > { %4398 = vmatmul.mubr.f32.gmra.mrb[6].mxu1 %v5701_v20  ;;  %4614 = vmatmul.mubr.f32.gmra.mrb[6].mxu0 %v5703_v22 }
 0x166   : > { %4406 = vmatprep.mubr.f32.mxu1 %v497_v62  ;;  %4622 = vmatprep.mubr.f32.mxu0 %v2192_v61  ;;  %v6467_v61 = vand.u32 4294901760, %v5653_v37  ;;  %v6468_v62 = vand.u32 4294901760, %v5655_v38  ;;  %v5913_v38 = vsub.f32 %v4048_v8, %v3026_v50 }
 0x168   : > { %v6446_v6 = vand.u32 4294901760, %v5913_v38 }
 0x169   : > { %4407 = vmatmul.mubr.f32.vlgmr.msra.gmra.mrb[0].mxu1 %v507_v24  ;;  %4623 = vmatmul.mubr.f32.vlgmr.msra.gmra.mrb[0].mxu0 %v2202_v25  ;;  %v6471_v24 = vand.u32 4294901760, %v5701_v20  ;;  %v6472_v25 = vand.u32 4294901760, %v5703_v22 }
 0x16a   : > { %4797 = vmatpush3.bf16.msra.mxu1 %v5494_v40  ;;  %4845 = vmatpush3.bf16.msra.mxu0 %v5500_v44  ;;  %v6465_v40 = vand.u32 4294901760, %v5627_v16  ;;  %v6466_v44 = vand.u32 4294901760, %v5629_v17  ;;  %v3029_v16 = vand.u32 4294901760, %v4049_v26 }
 0x16b   : > { %4409 = vmatprep.mubr.f32.mxu1 %v6461_v46  ;;  %4625 = vmatprep.mubr.f32.mxu0 %v6462_v51  ;;  %v4050_v46 = vld [vmem:[%s6429_s2 + $0x58] sm:$0x1] }
 0x16c   : > { %4422 = vmatprep.subr.mxu1 %v5526_v53  ;;  %4638 = vmatprep.subr.mxu0 %v5529_v54  ;;  %v5919_v20 = vsub.f32 %v4049_v26, %v3029_v16  ;;  %v5925_v23 = vpack.c.bf16 %v3029_v16, %v3026_v50 }
 0x16d   : > { %4410 = vmatmul.mubr.f32.gmra.mrb[2].mxu1 %v6463_v57  ;;  %4626 = vmatmul.mubr.f32.gmra.mrb[2].mxu0 %v6464_v58  ;;  %v2999_v58 = vsel %vm398_vm5, %v5714_v55, 0 }
 0x16e   : > { %4412 = vmatprep.mubr.f32.mxu1 %v6465_v40  ;;  %4628 = vmatprep.mubr.f32.mxu0 %v6466_v44  ;;  %v6445_v51 = vand.u32 4294901760, %v5919_v20  ;;  %v3023_v44 = vsel %vm423_vm2, %v4050_v46, 0 }
 0x16f   : > { %4423 = vmatpush3.msra.mxu1 %v5526_v53  ;;  %4639 = vmatpush3.msra.mxu0 %v5529_v54  ;;  %v300_v53 = vld [vmem:[%s6429_s2] sm:$0xff]  ;;  %v301_v54 = vld [vmem:[%s6429_s2 + $0x8] sm:$0xff] }
 0x170   : > { %4799 = vmatprep.subr.bf16.mxu1 %v5390_v33  ;;  %4847 = vmatprep.subr.bf16.mxu0 %v5404_v41  ;;  %v1228_v18 = vand.u32 4294901760, %v300_v53  ;;  %v1231_v49 = vand.u32 4294901760, %v301_v54 }
 0x171   : > { %4413 = vmatmul.mubr.f32.gmra.mrb[4].mxu1 %v6467_v61  ;;  %4629 = vmatmul.mubr.f32.gmra.mrb[4].mxu0 %v6468_v62  ;;  %v3177_v61 = vsub.f32 %v5913_v38, %v6446_v6 }
 0x172   : > { %4415 = vmatprep.mubr.f32.mxu1 %v6469_v4  ;;  %4631 = vmatprep.mubr.f32.mxu0 %v6470_v5  ;;  %v5907_v17 = vsub.f32 %v300_v53, %v1228_v18  ;;  %v5909_v37 = vsub.f32 %v301_v54, %v1231_v49  ;;  %v5923_v22 = vpack.c.bf16 %v1231_v49, %v1228_v18  ;;  %v5985_v54 = vand.u32 4294901760, %v3023_v44 }
 0x173   : > { %v3184_v4 = vsub.f32 %v5919_v20, %v6445_v51  ;;  %v5977_v5 = vsub.f32 %v2999_v58, %v2999_v58  ;;  %v3178_v26 = vand.u32 4294901760, %v3177_v61  ;;  %v3002_v18 = vsel %vm398_vm5, %v5730_v10, 0 }
 0x174   : > { %v6448_v39 = vand.u32 4294901760, %v5909_v37  ;;  %v1204_v49 = vsel %vm398_vm5, %v5733_v32, 0  ;;  %v5999_v16 = vsub.f32 %v3023_v44, %v5985_v54  ;;  %v3011_v61 = vsel %vm398_vm5, %v5774_v27, 0 }
 0x175   : > { %4416 = vmatmul.mubr.f32.gmra.mrb[6].mxu1 %v6471_v24  ;;  %4632 = vmatmul.mubr.f32.gmra.mrb[6].mxu0 %v6472_v25  ;;  %v3185_v50 = vand.u32 4294901760, %v3184_v4  ;;  %v6443_v46 = vand.u32 4294901760, %v5977_v5  ;;  %v6014_v58 = vsub.f32 %v1204_v49, %v1204_v49  ;;  %v1213_v4 = vsel %vm398_vm5, %v5777_v29, 0 }
 0x176   : > { %4424 = vmatprep.mubr.msk.f32.mxu1 %vm398_vm5, %v5519_v2  ;;  %4640 = vmatprep.mubr.msk.f32.mxu0 %vm398_vm5, %v5516_v52  ;;  %v1386_v40 = vsub.f32 %v5909_v37, %v6448_v39  ;;  %v6033_v44 = vand.u32 4294901760, %v5999_v16 }
 0x177   : > { %v6450_v49 = vand.u32 4294901760, %v6014_v58 }
 0x178   : > { %v1387_v25 = vand.u32 4294901760, %v1386_v40  ;;  %v6030_v40 = vpack.c.bf16 %v3185_v50, %v3178_v26  ;;  %6473 = vst [vmem:[#allocation5_spill] sm:$0xff] %v6033_v44 }
 0x179   : > { %4425 = vmatmul.mubr.msk.f32.vlgmr.msra.gmra.mrb[0].mxu1 %vm398_vm5, %v5538_v59  ;;  %4641 = vmatmul.mubr.msk.f32.vlgmr.msra.gmra.mrb[0].mxu0 %vm398_vm5, %v5541_v60 }
 0x17a   : > { %4801 = vmatpush3.bf16.msra.mxu1 %v5390_v33  ;;  %4849 = vmatpush3.bf16.msra.mxu0 %v5404_v41  ;;  %v302_v33 = vld [vmem:[%s6429_s2 + $0x10] sm:$0x1]  ;;  %v6449_v41 = vand.u32 4294901760, %v5907_v17 }
 0x17b   : > { %4427 = vmatprep.mubr.msk.f32.mxu1 %vm398_vm5, %v5566_v11  ;;  %4643 = vmatprep.mubr.msk.f32.mxu0 %vm398_vm5, %v5569_v12  ;;  %v1225_v57 = vsel %vm423_vm2, %v302_v33, 0 }
 0x17c   : > { %4440 = vmatprep.subr.mxu1 %v5407_v42  ;;  %4656 = vmatprep.subr.mxu0 %v5415_v45  ;;  %v5972_v62 = vand.u32 4294901760, %v1225_v57 }
 0x17d   : > { %4428 = vmatmul.mubr.msk.f32.gmra.mrb[2].mxu1 %vm398_vm5, %v5590_v34  ;;  %4644 = vmatmul.mubr.msk.f32.gmra.mrb[2].mxu0 %vm398_vm5, %v5593_v35 }
 0x17e   : > { %4430 = vmatprep.mubr.msk.f32.mxu1 %vm398_vm5, %v5614_v63  ;;  %4646 = vmatprep.mubr.msk.f32.mxu0 %vm398_vm5, %v5617_v0  ;;  %v5988_v8 = vsub.f32 %v1225_v57, %v5972_v62  ;;  %v6012_v57 = vsub.f32 %v3002_v18, %v3002_v18 }
 0x17f   : > { %4441 = vmatpush3.msra.mxu1 %v5407_v42  ;;  %4657 = vmatpush3.msra.mxu0 %v5415_v45  ;;  %v1201_v42 = vsel %vm398_vm5, %v5717_v56, 0  ;;  %v1379_v45 = vsub.f32 %v5907_v17, %v6449_v41 }
 0x180   : > { %4803 = vmatprep.subr.bf16.mxu1 %v5923_v22  ;;  %4851 = vmatprep.subr.bf16.mxu0 %v5925_v23  ;;  %v5979_v53 = vsub.f32 %v1201_v42, %v1201_v42  ;;  %v3005_v42 = vsel %vm398_vm5, %v5738_v28, 0  ;;  %v6447_v18 = vand.u32 4294901760, %v6012_v57 }
 0x181   : > { %4431 = vmatmul.mubr.msk.f32.gmra.mrb[4].mxu1 %vm398_vm5, %v5640_v14  ;;  %4647 = vmatmul.mubr.msk.f32.gmra.mrb[4].mxu0 %vm398_vm5, %v5643_v15  ;;  %v1380_v24 = vand.u32 4294901760, %v1379_v45  ;;  %v1207_v45 = vsel %vm398_vm5, %v5741_v36, 0 }
 0x182   : > { %4433 = vmatprep.mubr.msk.f32.mxu1 %vm398_vm5, %v5666_v1  ;;  %4649 = vmatprep.mubr.msk.f32.mxu0 %vm398_vm5, %v5669_v3  ;;  %v6444_v33 = vand.u32 4294901760, %v5979_v53 }
 0x185   : > { %4434 = vmatmul.mubr.msk.f32.gmra.mrb[6].mxu1 %vm398_vm5, %v5690_v30  ;;  %4650 = vmatmul.mubr.msk.f32.gmra.mrb[6].mxu0 %vm398_vm5, %v5693_v13 }
 0x186   : > { %4442 = vmatprep.mubr.msk.f32.mxu1 %vm398_vm5, %v5519_v2  ;;  %4658 = vmatprep.mubr.msk.f32.mxu0 %vm398_vm5, %v5516_v52  ;;  %v6007_v52 = vpack.c.bf16 %v1387_v25, %v1380_v24  ;;  %v6010_v2 = vand.u32 4294901760, %v5988_v8  ;;  %v6047_v24 = vsub.f32 %v3005_v42, %v3005_v42  ;;  %v6049_v25 = vsub.f32 %v1207_v45, %v1207_v45 }
 0x187   : > { %v3191_v42 = vsub.f32 %v5999_v16, %v6033_v44  ;;  %v3014_v45 = vsel %vm398_vm5, %v5794_v47, 0 }
 0x188   : > { %v1393_v26 = vsub.f32 %v5988_v8, %v6010_v2  ;;  %v6103_v51 = vsub.f32 %v3014_v45, %v3014_v45 }
 0x189   : > { %4443 = vmatmul.mubr.msk.f32.vlgmr.msra.gmra.mrb[0].mxu1 %vm398_vm5, %v5538_v59  ;;  %4659 = vmatmul.mubr.msk.f32.vlgmr.msra.gmra.mrb[0].mxu0 %vm398_vm5, %v5541_v60  ;;  %v3008_v59 = vsel %vm398_vm5, %v5756_v7, 0  ;;  %v1210_v60 = vsel %vm398_vm5, %v5759_v21, 0 }
 0x18a   : > { %4805 = vmatpush3.bf16.msra.mxu1 %v5923_v22  ;;  %4853 = vmatpush3.bf16.msra.mxu0 %v5925_v23  ;;  %v6059_v50 = vsub.f32 %v3008_v59, %v3008_v59 }
 0x18b   : > { %4445 = vmatprep.mubr.msk.f32.mxu1 %vm398_vm5, %v5566_v11  ;;  %4661 = vmatprep.mubr.msk.f32.mxu0 %vm398_vm5, %v5569_v12  ;;  %v1298_v11 = vsub.f32 %v5979_v53, %v6444_v33  ;;  %v3096_v12 = vsub.f32 %v5977_v5, %v6443_v46  ;;  %v6061_v46 = vsub.f32 %v1210_v60, %v1210_v60 }
 0x18c   : > { %4458 = vmatprep.subr.mxu1 %v5972_v62  ;;  %4674 = vmatprep.subr.mxu0 %v5985_v54  ;;  %v1308_v33 = vsub.f32 %v6014_v58, %v6450_v49 }
 0x18d   : > { %4446 = vmatmul.mubr.msk.f32.gmra.mrb[2].mxu1 %vm398_vm5, %v5590_v34  ;;  %4662 = vmatmul.mubr.msk.f32.gmra.mrb[2].mxu0 %vm398_vm5, %v5593_v35  ;;  %v6067_v34 = vsub.f32 %v3011_v61, %v3011_v61  ;;  %v6069_v35 = vsub.f32 %v1213_v4, %v1213_v4  ;;  %v1299_v59 = vand.u32 4294901760, %v1298_v11  ;;  %v3097_v60 = vand.u32 4294901760, %v3096_v12 }
 0x18e   : > { %4448 = vmatprep.mubr.msk.f32.mxu1 %vm398_vm5, %v5614_v63  ;;  %4664 = vmatprep.mubr.msk.f32.mxu0 %vm398_vm5, %v5617_v0  ;;  %v1216_v63 = vsel %vm398_vm5, %v5797_v48, 0  ;;  %v3017_v0 = vsel %vm398_vm5, %v5810_v31, 0  ;;  %v1219_v61 = vsel %vm398_vm5, %v5813_v9, 0  ;;  %v6453_v4 = vand.u32 4294901760, %v6049_v25 }
 0x18f   : > { %4459 = vmatpush3.msra.mxu1 %v5972_v62  ;;  %4675 = vmatpush3.msra.mxu0 %v5985_v54  ;;  %v6454_v11 = vand.u32 4294901760, %v6047_v24  ;;  %v3106_v12 = vsub.f32 %v6012_v57, %v6447_v18  ;;  %v6105_v6 = vsub.f32 %v1216_v63, %v1216_v63  ;;  %v6109_v41 = vsub.f32 %v3017_v0, %v3017_v0 }
 0x190   : > { %4807 = vmatprep.subr.bf16.mxu1 %v6007_v52  ;;  %4855 = vmatprep.subr.bf16.mxu0 %v6030_v40  ;;  %v6111_v49 = vsub.f32 %v1219_v61, %v1219_v61  ;;  %v1318_v45 = vsub.f32 %v6049_v25, %v6453_v4  ;;  %v1394_v0 = vand.u32 4294901760, %v1393_v26  ;;  %v3192_v61 = vand.u32 4294901760, %v3191_v42 }
 0x191   : > { %4449 = vmatmul.mubr.msk.f32.gmra.mrb[4].mxu1 %vm398_vm5, %v5640_v14  ;;  %4665 = vmatmul.mubr.msk.f32.gmra.mrb[4].mxu0 %vm398_vm5, %v5643_v15  ;;  %v6456_v14 = vand.u32 4294901760, %v6061_v46  ;;  %v6455_v15 = vand.u32 4294901760, %v6059_v50  ;;  %v3116_v63 = vsub.f32 %v6047_v24, %v6454_v11  ;;  %v3107_v39 = vand.u32 4294901760, %v3106_v12 }
 0x192   : > { %4451 = vmatprep.mubr.msk.f32.mxu1 %vm398_vm5, %v5666_v1  ;;  %4667 = vmatprep.mubr.msk.f32.mxu0 %vm398_vm5, %v5669_v3  ;;  %v3020_v1 = vsel %vm398_vm5, %v5824_v19, 0  ;;  %v1222_v3 = vsel %vm398_vm5, %v5827_v43, 0  ;;  %v1309_v18 = vand.u32 4294901760, %v1308_v33  ;;  %v6458_v11 = vand.u32 4294901760, %v6105_v6 }
 0x193   : > { %v6133_v44 = vsub.f32 %v3020_v1, %v3020_v1  ;;  %v6135_v4 = vsub.f32 %v1222_v3, %v1222_v3  ;;  %v6474_v33 = vand.u32 4294901760, %v6069_v35  ;;  %v6457_v12 = vand.u32 4294901760, %v6111_v49 }
 0x194   : > { %v1319_v1 = vand.u32 4294901760, %v1318_v45  ;;  %v3117_v3 = vand.u32 4294901760, %v3116_v63 }
 0x195   : > { %4452 = vmatmul.mubr.msk.f32.gmra.mrb[6].mxu1 %vm398_vm5, %v5690_v30  ;;  %4668 = vmatmul.mubr.msk.f32.gmra.mrb[6].mxu0 %vm398_vm5, %v5693_v13  ;;  %v1328_v30 = vsub.f32 %v6061_v46, %v6456_v14  ;;  %v3126_v13 = vsub.f32 %v6059_v50, %v6455_v15  ;;  %v1338_v42 = vsub.f32 %v6069_v35, %v6474_v33  ;;  %v3155_v15 = vand.u32 4294901760, %v6109_v41 }
 0x196   : > { %4460 = vmatprep.mubr.f32.mxu1 %v1299_v59  ;;  %4676 = vmatprep.mubr.f32.mxu0 %v3097_v60  ;;  %v6475_v59 = vand.u32 4294901760, %v6067_v34  ;;  %v4810_v33 = vpack.c.bf16 %v5909_v37, %v5907_v17  ;;  %v3165_v45 = vand.u32 4294901760, %v6133_v44 }
 0x197   : > { %v1329_v14 = vand.u32 4294901760, %v1328_v30  ;;  %v3127_v26 = vand.u32 4294901760, %v3126_v13  ;;  %v1339_v63 = vand.u32 4294901760, %v1338_v42  ;;  %v1358_v13 = vsub.f32 %v6111_v49, %v6457_v12 }
 0x198   : > { %v3136_v60 = vsub.f32 %v6067_v34, %v6475_v59  ;;  %v4858_v59 = vpack.c.bf16 %v5919_v20, %v5913_v38 }
 0x199   : > { %4461 = vmatmul.mubr.f32.vlgmr.msra.gmra.mrb[0].mxu1 %v1309_v18  ;;  %4677 = vmatmul.mubr.f32.vlgmr.msra.gmra.mrb[0].mxu0 %v3107_v39  ;;  %v1348_v39 = vsub.f32 %v6105_v6, %v6458_v11  ;;  %v6476_v18 = vand.u32 4294901760, %v6103_v51  ;;  %v1359_v12 = vand.u32 4294901760, %v1358_v13 }
 0x19a   : > { %4809 = vmatpush3.bf16.msra.mxu1 %v6007_v52  ;;  %4857 = vmatpush3.bf16.msra.mxu0 %v6030_v40  ;;  %v1367_v40 = vand.u32 4294901760, %v6135_v4  ;;  %v3137_v30 = vand.u32 4294901760, %v3136_v60  ;;  %v3166_v60 = vsub.f32 %v6133_v44, %v3165_v45 }
 0x19b   : > { %4463 = vmatprep.mubr.f32.mxu1 %v1319_v1  ;;  %4679 = vmatprep.mubr.f32.mxu0 %v3117_v3  ;;  %v3146_v52 = vsub.f32 %v6103_v51, %v6476_v18  ;;  %v3156_v1 = vsub.f32 %v6109_v41, %v3155_v15  ;;  %v1349_v3 = vand.u32 4294901760, %v1348_v39  ;;  %v6491_v39 = vand.u32 4294901760, %v6067_v34 }
 0x19c   : > { %4476 = vmatprep.subr.mxu1 %v1394_v0  ;;  %4692 = vmatprep.subr.mxu0 %v3192_v61  ;;  %v1368_v42 = vsub.f32 %v6135_v4, %v1367_v40 }
 0x19d   : > { %4464 = vmatmul.mubr.f32.gmra.mrb[2].mxu1 %v1329_v14  ;;  %4680 = vmatmul.mubr.f32.gmra.mrb[2].mxu0 %v3127_v26  ;;  %v3147_v18 = vand.u32 4294901760, %v3146_v52  ;;  %v3157_v11 = vand.u32 4294901760, %v3156_v1  ;;  %v6480_v26 = vand.u32 4294901760, %v5919_v20  ;;  %v6484_v20 = vand.u32 4294901760, %v6012_v57 }
 0x19e   : > { %4466 = vmatprep.mubr.f32.mxu1 %v1339_v63  ;;  %4682 = vmatprep.mubr.f32.mxu0 %v3137_v30  ;;  %v1369_v14 = vand.u32 4294901760, %v1368_v42 }
 0x19f   : > { %4477 = vmatpush3.msra.mxu1 %v1394_v0  ;;  %4693 = vmatpush3.msra.mxu0 %v3192_v61  ;;  %v3167_v0 = vand.u32 4294901760, %v3166_v60  ;;  %v6479_v61 = vand.u32 4294901760, %v5913_v38  ;;  %v6483_v38 = vand.u32 4294901760, %v6014_v58 }
 0x1a0   : > { %4811 = vmatprep.subr.bf16.mxu1 %v4810_v33  ;;  %4859 = vmatprep.subr.bf16.mxu0 %v4858_v59 }
 0x1a1   : > { %4467 = vmatmul.mubr.f32.gmra.mrb[4].mxu1 %v1349_v3  ;;  %4683 = vmatmul.mubr.f32.gmra.mrb[4].mxu0 %v3147_v18 }
 0x1a2   : > { %4469 = vmatprep.mubr.f32.mxu1 %v1359_v12  ;;  %4685 = vmatprep.mubr.f32.mxu0 %v3157_v11  ;;  %v4866_v12 = vpack.c.bf16 %v6480_v26, %v6479_v61 }
 0x1a5   : > { %4470 = vmatmul.mubr.f32.gmra.mrb[6].mxu1 %v1369_v14  ;;  %4686 = vmatmul.mubr.f32.gmra.mrb[6].mxu0 %v3167_v0 }
 0x1a6   : > { %4478 = vmatprep.mubr.msk.f32.mxu1 %vm398_vm5, %v5717_v56  ;;  %4694 = vmatprep.mubr.msk.f32.mxu0 %vm398_vm5, %v5714_v55 }
 0x1a9   : > { %4479 = vmatmul.mubr.msk.f32.vlgmr.msra.gmra.mrb[0].mxu1 %vm398_vm5, %v5733_v32  ;;  %4695 = vmatmul.mubr.msk.f32.vlgmr.msra.gmra.mrb[0].mxu0 %vm398_vm5, %v5730_v10 }
 0x1aa   : > { %4813 = vmatpush3.bf16.msra.mxu1 %v4810_v33  ;;  %4861 = vmatpush3.bf16.msra.mxu0 %v4858_v59  ;;  %v6485_v33 = vand.u32 4294901760, %v6049_v25  ;;  %v6486_v59 = vand.u32 4294901760, %v6047_v24 }
 0x1ab   : > { %4481 = vmatprep.mubr.msk.f32.mxu1 %vm398_vm5, %v5741_v36  ;;  %4697 = vmatprep.mubr.msk.f32.mxu0 %vm398_vm5, %v5738_v28 }
 0x1ac   : > { %4494 = vmatprep.subr.mxu1 %v5988_v8  ;;  %4710 = vmatprep.subr.mxu0 %v5999_v16 }
 0x1ad   : > { %4482 = vmatmul.mubr.msk.f32.gmra.mrb[2].mxu1 %vm398_vm5, %v5759_v21  ;;  %4698 = vmatmul.mubr.msk.f32.gmra.mrb[2].mxu0 %vm398_vm5, %v5756_v7 }
 0x1ae   : > { %4484 = vmatprep.mubr.msk.f32.mxu1 %vm398_vm5, %v5777_v29  ;;  %4700 = vmatprep.mubr.msk.f32.mxu0 %vm398_vm5, %v5774_v27 }
 0x1af   : > { %4495 = vmatpush3.msra.mxu1 %v5988_v8  ;;  %4711 = vmatpush3.msra.mxu0 %v5999_v16  ;;  %v6477_v8 = vand.u32 4294901760, %v5907_v17  ;;  %v6478_v16 = vand.u32 4294901760, %v5909_v37  ;;  %v6481_v17 = vand.u32 4294901760, %v5979_v53  ;;  %v6482_v37 = vand.u32 4294901760, %v5977_v5 }
 0x1b0   : > { %4815 = vmatprep.subr.bf16.mxu1 %v5923_v22  ;;  %4863 = vmatprep.subr.bf16.mxu0 %v5925_v23 }
 0x1b1   : > { %4485 = vmatmul.mubr.msk.f32.gmra.mrb[4].mxu1 %vm398_vm5, %v5797_v48  ;;  %4701 = vmatmul.mubr.msk.f32.gmra.mrb[4].mxu0 %vm398_vm5, %v5794_v47  ;;  %v4818_v11 = vpack.c.bf16 %v6478_v16, %v6477_v8 }
 0x1b2   : > { %4487 = vmatprep.mubr.msk.f32.mxu1 %vm398_vm5, %v5813_v9  ;;  %4703 = vmatprep.mubr.msk.f32.mxu0 %vm398_vm5, %v5810_v31 }
 0x1b5   : > { %4488 = vmatmul.mubr.msk.f32.gmra.mrb[6].mxu1 %vm398_vm5, %v5827_v43  ;;  %4704 = vmatmul.mubr.msk.f32.gmra.mrb[6].mxu0 %vm398_vm5, %v5824_v19 }
 0x1b6   : > { %4496 = vmatprep.mubr.f32.mxu1 %v5979_v53  ;;  %4712 = vmatprep.mubr.f32.mxu0 %v5977_v5  ;;  %v6487_v53 = vld [vmem:[#allocation5_spill] sm:$0xff]  ;;  %v6488_v5 = vand.u32 4294901760, %v6061_v46 }
 0x1b9   : > { %4497 = vmatmul.mubr.f32.vlgmr.msra.gmra.mrb[0].mxu1 %v6014_v58  ;;  %4713 = vmatmul.mubr.f32.vlgmr.msra.gmra.mrb[0].mxu0 %v6012_v57  ;;  %v6489_v58 = vand.u32 4294901760, %v6059_v50  ;;  %v6490_v57 = vand.u32 4294901760, %v6069_v35 }
 0x1ba   : > { %4817 = vmatpush3.bf16.msra.mxu1 %v5923_v22  ;;  %4865 = vmatpush3.bf16.msra.mxu0 %v5925_v23 }
 0x1bb   : > { %4499 = vmatprep.mubr.f32.mxu1 %v6049_v25  ;;  %4715 = vmatprep.mubr.f32.mxu0 %v6047_v24  ;;  %v6493_v24 = vand.u32 4294901760, %v6103_v51  ;;  %v6494_v25 = vand.u32 4294901760, %v6111_v49 }
 0x1bc   : > { %4512 = vmatprep.subr.mxu1 %v5972_v62  ;;  %4728 = vmatprep.subr.mxu0 %v5985_v54 }
 0x1bd   : > { %4500 = vmatmul.mubr.f32.gmra.mrb[2].mxu1 %v6061_v46  ;;  %4716 = vmatmul.mubr.f32.gmra.mrb[2].mxu0 %v6059_v50  ;;  %v6492_v46 = vand.u32 4294901760, %v6105_v6 }
 0x1be   : > { %4502 = vmatprep.mubr.f32.mxu1 %v6069_v35  ;;  %4718 = vmatprep.mubr.f32.mxu0 %v6067_v34 }
 0x1bf   : > { %4513 = vmatpush3.msra.mxu1 %v5972_v62  ;;  %4729 = vmatpush3.msra.mxu0 %v5985_v54 }
 0x1c0   : > { %4819 = vmatprep.subr.bf16.mxu1 %v4818_v11  ;;  %4867 = vmatprep.subr.bf16.mxu0 %v4866_v12 }
 0x1c1   : > { %4503 = vmatmul.mubr.f32.gmra.mrb[4].mxu1 %v6105_v6  ;;  %4719 = vmatmul.mubr.f32.gmra.mrb[4].mxu0 %v6103_v51 }
 0x1c2   : > { %4505 = vmatprep.mubr.f32.mxu1 %v6111_v49  ;;  %4721 = vmatprep.mubr.f32.mxu0 %v6109_v41 }
 0x1c5   : > { %4506 = vmatmul.mubr.f32.gmra.mrb[6].mxu1 %v6135_v4  ;;  %4722 = vmatmul.mubr.f32.gmra.mrb[6].mxu0 %v6133_v44 }
 0x1c6   : > { %4514 = vmatprep.mubr.f32.mxu1 %v6481_v17  ;;  %4730 = vmatprep.mubr.f32.mxu0 %v6482_v37 }
 0x1c9   : > { %4515 = vmatmul.mubr.f32.vlgmr.msra.gmra.mrb[0].mxu1 %v6483_v38  ;;  %4731 = vmatmul.mubr.f32.vlgmr.msra.gmra.mrb[0].mxu0 %v6484_v20 }
 0x1ca   : > { %4821 = vmatpush3.bf16.msra.mxu1 %v4818_v11  ;;  %4869 = vmatpush3.bf16.msra.mxu0 %v4866_v12 }
 0x1cb   : > { %4517 = vmatprep.mubr.f32.mxu1 %v6485_v33  ;;  %4733 = vmatprep.mubr.f32.mxu0 %v6486_v59 }
 0x1cc   : > { %4530 = vmatprep.subr.mxu1 %v6010_v2  ;;  %4746 = vmatprep.subr.mxu0 %v6487_v53 }
 0x1cd   : > { %4518 = vmatmul.mubr.f32.gmra.mrb[2].mxu1 %v6488_v5  ;;  %4734 = vmatmul.mubr.f32.gmra.mrb[2].mxu0 %v6489_v58 }
 0x1ce   : > { %4520 = vmatprep.mubr.f32.mxu1 %v6490_v57  ;;  %4736 = vmatprep.mubr.f32.mxu0 %v6491_v39 }
 0x1cf   : > { %4531 = vmatpush3.msra.mxu1 %v6010_v2  ;;  %4747 = vmatpush3.msra.mxu0 %v6487_v53 }
 0x1d0   : > { %4823 = vmatprep.subr.bf16.mxu1 %v5923_v22  ;;  %4871 = vmatprep.subr.bf16.mxu0 %v5925_v23 }
 0x1d1   : > { %4521 = vmatmul.mubr.f32.gmra.mrb[4].mxu1 %v6492_v46  ;;  %4737 = vmatmul.mubr.f32.gmra.mrb[4].mxu0 %v6493_v24 }
 0x1d2   : > { %4523 = vmatprep.mubr.f32.mxu1 %v6494_v25  ;;  %4739 = vmatprep.mubr.f32.mxu0 %v3155_v15 }
 0x1d5   : > { %4524 = vmatmul.mubr.f32.gmra.mrb[6].mxu1 %v1367_v40  ;;  %4740 = vmatmul.mubr.f32.gmra.mrb[6].mxu0 %v3165_v45 }
 0x1d6   : > { %4532 = vmatprep.mubr.msk.f32.mxu1 %vm398_vm5, %v5717_v56  ;;  %4748 = vmatprep.mubr.msk.f32.mxu0 %vm398_vm5, %v5714_v55 }
 0x1d9   : > { %4533 = vmatmul.mubr.msk.f32.vlgmr.msra.gmra.mrb[0].mxu1 %vm398_vm5, %v5733_v32  ;;  %4749 = vmatmul.mubr.msk.f32.vlgmr.msra.gmra.mrb[0].mxu0 %vm398_vm5, %v5730_v10 }
 0x1da   : > { %4825 = vmatpush3.bf16.msra.mxu1 %v5923_v22  ;;  %4873 = vmatpush3.bf16.msra.mxu0 %v5925_v23 }
 0x1db   : > { %4535 = vmatprep.mubr.msk.f32.mxu1 %vm398_vm5, %v5741_v36  ;;  %4751 = vmatprep.mubr.msk.f32.mxu0 %vm398_vm5, %v5738_v28 }
 0x1dc   : > { %4548 = vmatprep.subr.mxu1 %v5972_v62  ;;  %4764 = vmatprep.subr.mxu0 %v5985_v54 }
 0x1dd   : > { %4536 = vmatmul.mubr.msk.f32.gmra.mrb[2].mxu1 %vm398_vm5, %v5759_v21  ;;  %4752 = vmatmul.mubr.msk.f32.gmra.mrb[2].mxu0 %vm398_vm5, %v5756_v7 }
 0x1de   : > { %4538 = vmatprep.mubr.msk.f32.mxu1 %vm398_vm5, %v5777_v29  ;;  %4754 = vmatprep.mubr.msk.f32.mxu0 %vm398_vm5, %v5774_v27 }
 0x1df   : > { %4549 = vmatpush3.msra.mxu1 %v5972_v62  ;;  %4765 = vmatpush3.msra.mxu0 %v5985_v54 }
 0x1e1   : > { %4539 = vmatmul.mubr.msk.f32.gmra.mrb[4].mxu1 %vm398_vm5, %v5797_v48  ;;  %4755 = vmatmul.mubr.msk.f32.gmra.mrb[4].mxu0 %vm398_vm5, %v5794_v47 }
 0x1e2   : > { %4541 = vmatprep.mubr.msk.f32.mxu1 %vm398_vm5, %v5813_v9  ;;  %4757 = vmatprep.mubr.msk.f32.mxu0 %vm398_vm5, %v5810_v31 }
 0x1e5   : > { %4542 = vmatmul.mubr.msk.f32.gmra.mrb[6].mxu1 %vm398_vm5, %v5827_v43  ;;  %4758 = vmatmul.mubr.msk.f32.gmra.mrb[6].mxu0 %vm398_vm5, %v5824_v19 }
 0x1e6   : > { %4550 = vmatprep.mubr.msk.f32.mxu1 %vm398_vm5, %v5717_v56  ;;  %4766 = vmatprep.mubr.msk.f32.mxu0 %vm398_vm5, %v5714_v55 }
 0x1e9   : > { %4551 = vmatmul.mubr.msk.f32.vlgmr.msra.gmra.mrb[0].mxu1 %vm398_vm5, %v5733_v32  ;;  %4767 = vmatmul.mubr.msk.f32.vlgmr.msra.gmra.mrb[0].mxu0 %vm398_vm5, %v5730_v10 }
 0x1ea   : > { %4553 = vmatprep.mubr.msk.f32.mxu1 %vm398_vm5, %v5741_v36  ;;  %4769 = vmatprep.mubr.msk.f32.mxu0 %vm398_vm5, %v5738_v28 }
 0x1ed   : > { %4554 = vmatmul.mubr.msk.f32.gmra.mrb[2].mxu1 %vm398_vm5, %v5759_v21  ;;  %4770 = vmatmul.mubr.msk.f32.gmra.mrb[2].mxu0 %vm398_vm5, %v5756_v7 }
 0x1ee   : > { %4556 = vmatprep.mubr.msk.f32.mxu1 %vm398_vm5, %v5777_v29  ;;  %4772 = vmatprep.mubr.msk.f32.mxu0 %vm398_vm5, %v5774_v27 }
 0x1f1   : > { %4557 = vmatmul.mubr.msk.f32.gmra.mrb[4].mxu1 %vm398_vm5, %v5797_v48  ;;  %4773 = vmatmul.mubr.msk.f32.gmra.mrb[4].mxu0 %vm398_vm5, %v5794_v47 }
 0x1f2   : > { %4559 = vmatprep.mubr.msk.f32.mxu1 %vm398_vm5, %v5813_v9  ;;  %4775 = vmatprep.mubr.msk.f32.mxu0 %vm398_vm5, %v5810_v31 }
 0x1f5   : > { %4560 = vmatmul.mubr.msk.f32.gmra.mrb[6].mxu1 %vm398_vm5, %v5827_v43  ;;  %4776 = vmatmul.mubr.msk.f32.gmra.mrb[6].mxu0 %vm398_vm5, %v5824_v19 }
 0x2bc   : > { %v4552_v36 = vpop.f32.mrb[0].mxu1  ;;  %v4768_v55 = vpop.f32.mrb[0].mxu0 }
 0x2bd   : > { %v4874_v56 = vadd.f32 %v4768_v55, %v4552_v36  ;;  %v1954_v10 = vpop.f32.mrb[1].mxu1  ;;  %v3752_v32 = vpop.f32.mrb[1].mxu0 }
 0x2be   : > { %v4875_v28 = vadd.f32 %v3752_v32, %v1954_v10 }
 0x2bf   : > { %3807 = vst [vmem:[%s6353_s28 + $0x8] sm:$0xff] %v4874_v56 }
 0x2c0   : > { %3806 = vst [vmem:[%s6353_s28] sm:$0xff] %v4875_v28  ;;  %v4555_v7 = vpop.f32.mrb[2].mxu1  ;;  %v4771_v21 = vpop.f32.mrb[2].mxu0 }
 0x2c1   : > { %v4876_v27 = vadd.f32 %v4771_v21, %v4555_v7  ;;  %v1966_v29 = vpop.f32.mrb[3].mxu1  ;;  %v3764_v47 = vpop.f32.mrb[3].mxu0 }
 0x2c2   : > { %v4877_v48 = vadd.f32 %v3764_v47, %v1966_v29 }
 0x2c3   : > { %3809 = vst [vmem:[%s6353_s28 + $0x18] sm:$0xff] %v4876_v27 }
 0x2c4   : > { %3808 = vst [vmem:[%s6353_s28 + $0x10] sm:$0xff] %v4877_v48  ;;  %v4558_v31 = vpop.f32.mrb[4].mxu1  ;;  %v4774_v9 = vpop.f32.mrb[4].mxu0 }
 0x2c5   : > { %v4878_v19 = vadd.f32 %v4774_v9, %v4558_v31  ;;  %v1978_v43 = vpop.f32.mrb[5].mxu1  ;;  %v3776_v22 = vpop.f32.mrb[5].mxu0 }
 0x2c6   : > { %v4879_v23 = vadd.f32 %v3776_v22, %v1978_v43 }
 0x2c7   : > { %3811 = vst [vmem:[%s6353_s28 + $0x28] sm:$0xff] %v4878_v19 }
 0x2c8   : > { %3810 = vst [vmem:[%s6353_s28 + $0x20] sm:$0xff] %v4879_v23  ;;  %v4561_v41 = vpop.f32.mrb[6].mxu1  ;;  %v4777_v6 = vpop.f32.mrb[6].mxu0 }
 0x2c9   : > { %v4880_v51 = vadd.f32 %v4777_v6, %v4561_v41  ;;  %v1990_v62 = vpop.f32.mrb[7].mxu1  ;;  %v3788_v54 = vpop.f32.mrb[7].mxu0 }
 0x2ca   : > { %v4881_v2 = vadd.f32 %v3788_v54, %v1990_v62 }
 0x2cb   : > { %3813 = vst [vmem:[%s6353_s28 + $0x38] sm:$0xff] %v4880_v51 }
 0x2cc   : > { %3812 = vst [vmem:[%s6353_s28 + $0x30] sm:$0xff] %v4881_v2 }
 0x2cd   : > { %5147 = shalt.err (!%p5144_p6)
}
 0x2ce   : > { %s5148_s20 = scalar_lea.hbm %s6366_s15, 1024  ;;  %s5152_s27 = scalar_lea.hbm %s6430_s3, 8192 }
 0x2cf   : > { %p5149_p7 = scmp.ne.s32.totalorder %s6366_s15, %s5148_s20  ;;  %p5153_p11 = scmp.lt.u32.totalorder %s6366_s15, %s6430_s3 }
 0x2d0   : > { %p5154_p12 = scmp.lt.u32.totalorder %s5152_s27, %s5148_s20  ;;  %p5156_p0 = scmp.lt.u32.totalorder %s5148_s20, %s6366_s15 }
 0x2d1   : > { %p5150_p9 = pnand %p5149_p7, %p5306_p3 }
 0x2d2   : > { %p5155_p13 = por %p5154_p12, %p5153_p11 }
 0x2d3   : > { %p5151_p10 = pneg %p5150_p9 }
 0x2d4   : > { %p5157_p1 = por %p5156_p0, %p5155_p13 }
 0x2d6   : > { %p5158_p2 = pnand %p5157_p1, %p5151_p10 }
 0x2d8   : > { %5161 = shalt.err (!%p5158_p2)
}
 0x2d9   : > { %s5233_s16 = smov 128   ;;  %s5234_s6 = smov 8  }
 0x2da   : > { %5058 = dma.vmem_to_hbm [thread:$0]  (%p5306_p3), %s6369_s4, 1024, %s6366_s15, %s6375_s5, %s5233_s16, %s5233_s16, %s5234_s6  }
 0x2db PF: > { %p5064_p4 = scmp.ge.s32.totalorder %s5228_s19, 2  ;;  %s3845_s7 = sand.u32 1, %s5200_s12  }
 0x2dc   : > { %s3846_s8 = scalar_lea.sflag [#allocation3], %s3845_s7 }
 0x2dd   : > { %p5061_p5 = pnand %p5064_p4, %p5315_p8 }
 0x2df   : > { %5195 = dma.done.wait (!%p5061_p5), %s3846_s8, 1024  }
 0x2e0   : > { %5197 = vsyncadd (!%p5061_p5), %s3846_s8, 4294966272  ;;  %s16_s19 = sadd.s32 1, %s5228_s19   ;;  %s6495_s12 = smov %s5204_s13 }
 0x2e1   : > { %p13_p6 = scmp.ge.s32.totalorder %s16_s19, 10   ;;  %s6496_s13 = smov %s5208_s14 }
 0x2e2   : > { %s6497_s14 = smov %s5324_s30  ;;  %s6498_s15 = smov %s5220_s17 }
 0x2e3   : > { %s6499_s16 = smov %s5224_s18  ;;  %s6500_s17 = smov %s6503_s22 }
 0x2e4   : > { %s6501_s18 = smov %s6507_s23  ;;  %15 = sbr.rel (!%p13_p6) target bundleno = 5 (0x5), region = 74 }
 0x2eb   :  { %3851 = vsyncpa [#allocation3], 1 }
 0x2ec   :  { %3853 = vsyncpa [#allocation3 + $0x1], 1 }

</bundles_post_ra>
